<compile_context>
chip_gen: v7x
topology: tpu7x:2x2x1
jax: 0.10.0
libtpu: 0.0.40
codegen_flags: <defaults>
</compile_context>

<pallas_src>
import functools
import math

import jax
import jax.numpy as jnp
from jax import lax
from jax.experimental import pallas as pl
from jax.experimental.pallas import tpu as pltpu


def _nt_dot(x, w):
    """x @ w.T via dot_general (contract last dims; no materialized transpose)."""
    return lax.dot_general(x, w, (((1,), (1,)), ((), ())),
                           preferred_element_type=jnp.float32)


def _mha_kernel(q_ref, k_ref, v_ref, wq_ref, wot_ref, o_ref,
                qh_ref, m_ref, l_ref, ctx_ref, acc_ref, *,
                scale, mxu_dtype):
    """One (batch, q-tile, head, kv-tile) grid step.

    q_ref   : (1, tq, D)   query rows for this q-tile
    k_ref   : (1, tk, D)   key rows for this kv-tile
    v_ref   : (1, tk, D)   value rows for this kv-tile
    wq_ref  : (dh, D)      head h's rows of W_q   (nn.Linear weight, (out, in))
    wot_ref : (dh, D)      head h's rows of W_o^T (== head h's columns of W_o)
    o_ref   : (1, tq, D)   output block (written once at the last head/kv step)
    scratch : qh (tq,dh), m (tq,1), l (tq,1), ctx (tq,dh), acc (tq,D)  (f32)
    """
    h, kv = pl.program_id(2), pl.program_id(3)
    nh, nkv = pl.num_programs(2), pl.num_programs(3)
    tk = k_ref.shape[1]

    def mx(x):  # optional bf16 cast for MXU operands; accumulation stays f32
        return x if mxu_dtype is None else x.astype(mxu_dtype)

    wq = wq_ref[...]

    @pl.when(jnp.logical_and(h == 0, kv == 0))
    def _():                                  # new output block: reset accumulator
        acc_ref[...] = jnp.zeros_like(acc_ref)

    @pl.when(kv == 0)
    def _():                                  # new head: reset softmax state, project Q
        m_ref[...] = jnp.full_like(m_ref, -jnp.inf)
        l_ref[...] = jnp.zeros_like(l_ref)
        ctx_ref[...] = jnp.zeros_like(ctx_ref)
        qh_ref[...] = _nt_dot(mx(q_ref[0]), mx(wq))           # (tq, dh)

    # Fused K/V projection for this head & kv-tile: one MXU matmul on the
    # row-stacked [K; V] operand instead of two separate ones.
    kvp = _nt_dot(mx(jnp.concatenate([k_ref[0], v_ref[0]], axis=0)), mx(wq))
    kh, vh = kvp[:tk], kvp[tk:]                               # (tk, dh) each

    # Scores: NT matmul (contract d_head) -- no explicit K transpose.
    s = _nt_dot(mx(qh_ref[...]), mx(kh)) * scale              # (tq, tk)
    # TODO(synk): optional attention mask (masked_fill_ with -inf) not wired in.

    # Online softmax update (f32 on VPU/EUP).
    m_prev = m_ref[...]
    m_new = jnp.maximum(m_prev, jnp.max(s, axis=-1, keepdims=True))
    alpha = jnp.exp(m_prev - m_new)
    p = jnp.exp(s - m_new)
    l_ref[...] = alpha * l_ref[...] + jnp.sum(p, axis=-1, keepdims=True)
    ctx_ref[...] = alpha * ctx_ref[...] + jnp.dot(
        mx(p), mx(vh), preferred_element_type=jnp.float32)
    m_ref[...] = m_new

    @pl.when(kv == nkv - 1)
    def _():                                  # head done: fold into output projection
        denom = l_ref[...]
        r = pl.reciprocal(denom, approx=True)                 # EUP slot
        r = r * (2.0 - denom * r)                             # one Newton step
        ctx = ctx_ref[...] * r                                # (tq, dh)
        acc_ref[...] += jnp.dot(mx(ctx), mx(wot_ref[...]),
                                preferred_element_type=jnp.float32)

    @pl.when(jnp.logical_and(h == nh - 1, kv == nkv - 1))
    def _():                                  # all heads done: lane-dense store
        o_ref[0] = acc_ref[...].astype(o_ref.dtype)


def _pick_tile(dim, target):
    """Largest tile <= target that divides `dim` and is sublane-aligned."""
    if dim <= target:
        return dim
    for t in range(target, 7, -1):
        if dim % t == 0 and t % 8 == 0:
            return t
    return dim


def multi_head_forward(Q, K, V, Wq, Wo, num_heads, *,
                       q_tile=256, kv_tile=512, mxu_dtype=None):
    """Pallas implementation of MultiHead.forward(Q, K, V, mask=None)."""
    B, S, D = Q.shape
    assert K.shape == (B, S, D) and V.shape == (B, S, D)
    assert D % num_heads == 0
    dh = D // num_heads
    assert dh % 8 == 0, "head_dim must be a multiple of 8 for the weight-block head split"
    assert S % 8 == 0

    tq = _pick_tile(S, q_tile)
    tk = _pick_tile(S, kv_tile)
    n_q, n_kv = S // tq, S // tk

    # Single host-side transpose of W_o so head h's output-projection slice is a
    # sublane (row) block (dh, D).  W_q needs no transpose (NT dot_general in-kernel).
    wo_t = Wo.T

    kernel = functools.partial(_mha_kernel,
                               scale=1.0 / math.sqrt(float(dh)),
                               mxu_dtype=mxu_dtype)

    flops = int(2 * B * S * D * D              # Q projection
                + 4 * B * n_q * S * D * D      # K/V projection (repeated per q-tile)
                + 2 * B * S * S * D            # Q K^T
                + 2 * B * S * S * D            # P V
                + 2 * B * S * D * D)           # output projection
    cost = pl.CostEstimate(
        flops=flops,
        transcendentals=int(B * num_heads * S * S),
        bytes_accessed=int(4 * (4 * B * S * D + 2 * D * D)))

    return pl.pallas_call(
        kernel,
        out_shape=jax.ShapeDtypeStruct((B, S, D), Q.dtype),
        grid=(B, n_q, num_heads, n_kv),
        in_specs=[
            pl.BlockSpec((1, tq, D), lambda b, i, h, kv: (b, i, 0)),    # Q
            pl.BlockSpec((1, tk, D), lambda b, i, h, kv: (b, kv, 0)),   # K
            pl.BlockSpec((1, tk, D), lambda b, i, h, kv: (b, kv, 0)),   # V
            pl.BlockSpec((dh, D),    lambda b, i, h, kv: (h, 0)),       # W_q rows of head h
            pl.BlockSpec((dh, D),    lambda b, i, h, kv: (h, 0)),       # W_o^T rows of head h
        ],
        out_specs=pl.BlockSpec((1, tq, D), lambda b, i, h, kv: (b, i, 0)),
        scratch_shapes=[
            pltpu.VMEM((tq, dh), jnp.float32),   # projected Q for current head
            pltpu.VMEM((tq, 1), jnp.float32),    # running softmax max
            pltpu.VMEM((tq, 1), jnp.float32),    # running softmax denom
            pltpu.VMEM((tq, dh), jnp.float32),   # running context
            pltpu.VMEM((tq, D), jnp.float32),    # output-projection accumulator
        ],
        compiler_params=pltpu.CompilerParams(
            dimension_semantics=("parallel", "parallel", "arbitrary", "arbitrary"),
            vmem_limit_bytes=48 * 1024 * 1024),
        cost_estimate=cost,
    )(Q, K, V, Wq, wo_t)


def multi_head_reference(Q, K, V, Wq, Wo, num_heads):
    """Pure-JAX reference mirroring the PyTorch forward exactly."""
    B, S, D = Q.shape
    dh = D // num_heads

    def proj_split_cat(x):
        xp = x @ Wq.T                                          # (B, S, D)
        # .split(dh, dim=-1) then torch.cat(dim=0) -> (H*B, S, dh), head-major.
        return jnp.concatenate(
            [xp[..., h * dh:(h + 1) * dh] for h in range(num_heads)], axis=0)

    q2, k2, v2 = proj_split_cat(Q), proj_split_cat(K), proj_split_cat(V)
    w = jnp.einsum('bij,bkj->bik', q2, k2) / math.sqrt(float(dh))
    w = jax.nn.softmax(w, axis=-1)
    c = jnp.einsum('bik,bkd->bid', w, v2)                      # (H*B, S, dh)
    c = jnp.concatenate(
        [c[h * B:(h + 1) * B] for h in range(num_heads)], axis=-1)
    return c @ Wo.T


if __name__ == "__main__":
    B, S, D, H = 2, 128, 128, 4  # batch, seq, d_model, num_heads (head_dim = 32)
    key = jax.random.PRNGKey(0)
    kq, kk, kv_, kw1, kw2, kw3, kw4 = jax.random.split(key, 7)

    Q = jax.random.normal(kq, (B, S, D), dtype=jnp.float32)
    K = jax.random.normal(kk, (B, S, D), dtype=jnp.float32)
    V = jax.random.normal(kv_, (B, S, D), dtype=jnp.float32)

    # nn.Linear(d_model, d_model, bias=False) weights: (out, in) = (D, D).
    bound = 1.0 / math.sqrt(D)
    Wq = jax.random.uniform(kw1, (D, D), jnp.float32, -bound, bound)
    Wk = jax.random.uniform(kw2, (D, D), jnp.float32, -bound, bound)  # unused in fwd
    Wv = jax.random.uniform(kw3, (D, D), jnp.float32, -bound, bound)  # unused in fwd
    Wo = jax.random.uniform(kw4, (D, D), jnp.float32, -bound, bound)

    out = jax.block_until_ready(multi_head_forward(Q, K, V, Wq, Wo, H))
    ref = multi_head_reference(Q, K, V, Wq, Wo, H)

    assert out.shape == (B, S, D)
    assert jnp.allclose(out, ref, atol=1e-4, rtol=1e-4), "mismatch vs reference"

    print("KERNEL_OK")
</pallas_src>

<mosaic_0001>
module attributes {stable_mosaic.version = 11 : i64} {
  func.func @_mha_kernel(%arg0: i32, %arg1: i32, %arg2: i32, %arg3: i32, %arg4: memref<1x128x128xf32, #tpu.memory_space<vmem>>, %arg5: memref<1x128x128xf32, #tpu.memory_space<vmem>>, %arg6: memref<1x128x128xf32, #tpu.memory_space<vmem>>, %arg7: memref<32x128xf32, #tpu.memory_space<vmem>>, %arg8: memref<32x128xf32, #tpu.memory_space<vmem>>, %arg9: memref<1x128x128xf32, #tpu.memory_space<vmem>>, %arg10: memref<128x32xf32, #tpu.memory_space<vmem>>, %arg11: memref<128x1xf32, #tpu.memory_space<vmem>>, %arg12: memref<128x1xf32, #tpu.memory_space<vmem>>, %arg13: memref<128x32xf32, #tpu.memory_space<vmem>>, %arg14: memref<128x128xf32, #tpu.memory_space<vmem>>) attributes {dimension_semantics = [#tpu.dimension_semantics<parallel>, #tpu.dimension_semantics<parallel>, #tpu.dimension_semantics<arbitrary>, #tpu.dimension_semantics<arbitrary>], iteration_bounds = array<i64: 2, 1, 4, 1>, scalar_prefetch = 0 : i64, scratch_operands = 5 : i64, tpu.core_type = #tpu.core_type<tc>, window_params = [{transform_indices = @transform_0, window_bounds = array<i64: 1, 128, 128>}, {transform_indices = @transform_1, window_bounds = array<i64: 1, 128, 128>}, {transform_indices = @transform_2, window_bounds = array<i64: 1, 128, 128>}, {transform_indices = @transform_3, window_bounds = array<i64: 32, 128>}, {transform_indices = @transform_4, window_bounds = array<i64: 32, 128>}, {transform_indices = @transform_5, window_bounds = array<i64: 1, 128, 128>}]} {
    %c0 = arith.constant 0 : index
    %c0_0 = arith.constant 0 : index
    %0 = vector.load %arg7[%c0, %c0_0] : memref<32x128xf32, #tpu.memory_space<vmem>>, vector<32x128xf32>
    %c0_i32 = arith.constant 0 : i32
    %1 = arith.cmpi eq, %arg2, %c0_i32 : i32
    %c0_i32_1 = arith.constant 0 : i32
    %2 = arith.cmpi eq, %arg3, %c0_i32_1 : i32
    %3 = arith.andi %1, %2 : i1
    %4 = arith.extui %3 : i1 to i32
    %c0_i32_2 = arith.constant 0 : i32
    %5 = arith.cmpi ne, %4, %c0_i32_2 : i32
    scf.if %5 {
      %cst_34 = arith.constant 0.000000e+00 : f32
      %51 = vector.broadcast %cst_34 : f32 to vector<128x128xf32>
      %c0_35 = arith.constant 0 : index
      %c0_36 = arith.constant 0 : index
      %52 = vector.load %arg14[%c0_35, %c0_36] : memref<128x128xf32, #tpu.memory_space<vmem>>, vector<128x128xf32>
      tpu.vector_store %arg14[%c0_35, %c0_36], %51 {strides = array<i32>} : memref<128x128xf32, #tpu.memory_space<vmem>>, vector<128x128xf32>,
    } else {
    }
    %c0_i32_3 = arith.constant 0 : i32
    %6 = arith.cmpi eq, %arg3, %c0_i32_3 : i32
    %7 = arith.extui %6 : i1 to i32
    %c0_i32_4 = arith.constant 0 : i32
    %8 = arith.cmpi ne, %7, %c0_i32_4 : i32
    scf.if %8 {
      %cst_34 = arith.constant 0xFF800000 : f32
      %51 = vector.broadcast %cst_34 : f32 to vector<128x1xf32>
      %c0_35 = arith.constant 0 : index
      %c0_36 = arith.constant 0 : index
      %52 = vector.load %arg11[%c0_35, %c0_36] : memref<128x1xf32, #tpu.memory_space<vmem>>, vector<128x1xf32>
      tpu.vector_store %arg11[%c0_35, %c0_36], %51 {strides = array<i32>} : memref<128x1xf32, #tpu.memory_space<vmem>>, vector<128x1xf32>,
      %cst_37 = arith.constant 0.000000e+00 : f32
      %53 = vector.broadcast %cst_37 : f32 to vector<128x1xf32>
      %c0_38 = arith.constant 0 : index
      %c0_39 = arith.constant 0 : index
      %54 = vector.load %arg12[%c0_38, %c0_39] : memref<128x1xf32, #tpu.memory_space<vmem>>, vector<128x1xf32>
      tpu.vector_store %arg12[%c0_38, %c0_39], %53 {strides = array<i32>} : memref<128x1xf32, #tpu.memory_space<vmem>>, vector<128x1xf32>,
      %cst_40 = arith.constant 0.000000e+00 : f32
      %55 = vector.broadcast %cst_40 : f32 to vector<128x32xf32>
      %c0_41 = arith.constant 0 : index
      %c0_42 = arith.constant 0 : index
      %56 = vector.load %arg13[%c0_41, %c0_42] : memref<128x32xf32, #tpu.memory_space<vmem>>, vector<128x32xf32>
      tpu.vector_store %arg13[%c0_41, %c0_42], %55 {strides = array<i32>} : memref<128x32xf32, #tpu.memory_space<vmem>>, vector<128x32xf32>,
      %c0_43 = arith.constant 0 : index
      %c0_44 = arith.constant 0 : index
      %c0_45 = arith.constant 0 : index
      %57 = vector.load %arg4[%c0_43, %c0_44, %c0_45] : memref<1x128x128xf32, #tpu.memory_space<vmem>>, vector<1x128x128xf32>
      %58 = vector.shape_cast %57 : vector<1x128x128xf32> to vector<128x128xf32>
      %cst_46 = arith.constant dense<0.000000e+00> : vector<128x32xf32>
      %59 = tpu.matmul %58, %0, %cst_46 {dimension_numbers = #tpu.dot_dimension_numbers<[1], [1], [0], [0], [0, 0, 1, 0], [], []>} : vector<128x128xf32>, vector<32x128xf32>, vector<128x32xf32> -> vector<128x32xf32>
      %c0_47 = arith.constant 0 : index
      %c0_48 = arith.constant 0 : index
      %60 = vector.load %arg10[%c0_47, %c0_48] : memref<128x32xf32, #tpu.memory_space<vmem>>, vector<128x32xf32>
      tpu.vector_store %arg10[%c0_47, %c0_48], %59 {strides = array<i32>} : memref<128x32xf32, #tpu.memory_space<vmem>>, vector<128x32xf32>,
    } else {
    }
    %c0_5 = arith.constant 0 : index
    %c0_6 = arith.constant 0 : index
    %c0_7 = arith.constant 0 : index
    %9 = vector.load %arg5[%c0_5, %c0_6, %c0_7] : memref<1x128x128xf32, #tpu.memory_space<vmem>>, vector<1x128x128xf32>
    %10 = vector.shape_cast %9 : vector<1x128x128xf32> to vector<128x128xf32>
    %c0_8 = arith.constant 0 : index
    %c0_9 = arith.constant 0 : index
    %c0_10 = arith.constant 0 : index
    %11 = vector.load %arg6[%c0_8, %c0_9, %c0_10] : memref<1x128x128xf32, #tpu.memory_space<vmem>>, vector<1x128x128xf32>
    %12 = vector.shape_cast %11 : vector<1x128x128xf32> to vector<128x128xf32>
    %13 = tpu.concatenate %10, %12 in 0 : vector<128x128xf32>, vector<128x128xf32> -> vector<256x128xf32>
    %cst = arith.constant dense<0.000000e+00> : vector<256x32xf32>
    %14 = tpu.matmul %13, %0, %cst {dimension_numbers = #tpu.dot_dimension_numbers<[1], [1], [0], [0], [0, 0, 1, 0], [], []>} : vector<256x128xf32>, vector<32x128xf32>, vector<256x32xf32> -> vector<256x32xf32>
    %15 = vector.extract_strided_slice %14 {offsets = [0, 0], sizes = [128, 32], strides = [1, 1]} : vector<256x32xf32> to vector<128x32xf32>
    %16 = vector.extract_strided_slice %14 {offsets = [128, 0], sizes = [128, 32], strides = [1, 1]} : vector<256x32xf32> to vector<128x32xf32>
    %c0_11 = arith.constant 0 : index
    %c0_12 = arith.constant 0 : index
    %17 = vector.load %arg10[%c0_11, %c0_12] : memref<128x32xf32, #tpu.memory_space<vmem>>, vector<128x32xf32>
    %cst_13 = arith.constant dense<0.000000e+00> : vector<128x128xf32>
    %18 = tpu.matmul %17, %15, %cst_13 {dimension_numbers = #tpu.dot_dimension_numbers<[1], [1], [0], [0], [0, 0, 1, 0], [], []>} : vector<128x32xf32>, vector<128x32xf32>, vector<128x128xf32> -> vector<128x128xf32>
    %cst_14 = arith.constant 0.176776692 : f32
    %19 = vector.broadcast %cst_14 : f32 to vector<128x128xf32>
    %20 = arith.mulf %18, %19 : vector<128x128xf32>
    %c0_15 = arith.constant 0 : index
    %c0_16 = arith.constant 0 : index
    %21 = vector.load %arg11[%c0_15, %c0_16] : memref<128x1xf32, #tpu.memory_space<vmem>>, vector<128x1xf32>
    %cst_17 = arith.constant dense<0xFF800000> : vector<128xf32>
    %22 = vector.multi_reduction <maximumf>, %20, %cst_17 [1] : vector<128x128xf32> to vector<128xf32>
    %23 = vector.shape_cast %22 : vector<128xf32> to vector<128x1xf32>
    %24 = arith.maximumf %21, %23 : vector<128x1xf32>
    %25 = arith.subf %21, %24 : vector<128x1xf32>
    %26 = math.exp %25 : vector<128x1xf32>
    %27 = vector.broadcast %24 : vector<128x1xf32> to vector<128x128xf32>
    %28 = arith.subf %20, %27 : vector<128x128xf32>
    %29 = math.exp %28 : vector<128x128xf32>
    %c0_18 = arith.constant 0 : index
    %c0_19 = arith.constant 0 : index
    %30 = vector.load %arg12[%c0_18, %c0_19] : memref<128x1xf32, #tpu.memory_space<vmem>>, vector<128x1xf32>
    %31 = arith.mulf %26, %30 : vector<128x1xf32>
    %cst_20 = arith.constant dense<0.000000e+00> : vector<128xf32>
    %32 = vector.multi_reduction <add>, %29, %cst_20 [1] : vector<128x128xf32> to vector<128xf32>
    %33 = vector.shape_cast %32 : vector<128xf32> to vector<128x1xf32>
    %34 = arith.addf %31, %33 : vector<128x1xf32>
    %c0_21 = arith.constant 0 : index
    %c0_22 = arith.constant 0 : index
    %35 = vector.load %arg12[%c0_21, %c0_22] : memref<128x1xf32, #tpu.memory_space<vmem>>, vector<128x1xf32>
    tpu.vector_store %arg12[%c0_21, %c0_22], %34 {strides = array<i32>} : memref<128x1xf32, #tpu.memory_space<vmem>>, vector<128x1xf32>,
    %c0_23 = arith.constant 0 : index
    %c0_24 = arith.constant 0 : index
    %36 = vector.load %arg13[%c0_23, %c0_24] : memref<128x32xf32, #tpu.memory_space<vmem>>, vector<128x32xf32>
    %37 = vector.broadcast %26 : vector<128x1xf32> to vector<128x32xf32>
    %38 = arith.mulf %37, %36 : vector<128x32xf32>
    %cst_25 = arith.constant dense<0.000000e+00> : vector<128x32xf32>
    %39 = tpu.matmul %29, %16, %cst_25 {dimension_numbers = #tpu.dot_dimension_numbers<[1], [0], [0], [1], [0, 0, 1, 1], [], []>} : vector<128x128xf32>, vector<128x32xf32>, vector<128x32xf32> -> vector<128x32xf32>
    %40 = arith.addf %38, %39 : vector<128x32xf32>
    %c0_26 = arith.constant 0 : index
    %c0_27 = arith.constant 0 : index
    %41 = vector.load %arg13[%c0_26, %c0_27] : memref<128x32xf32, #tpu.memory_space<vmem>>, vector<128x32xf32>
    tpu.vector_store %arg13[%c0_26, %c0_27], %40 {strides = array<i32>} : memref<128x32xf32, #tpu.memory_space<vmem>>, vector<128x32xf32>,
    %c0_28 = arith.constant 0 : index
    %c0_29 = arith.constant 0 : index
    %42 = vector.load %arg11[%c0_28, %c0_29] : memref<128x1xf32, #tpu.memory_space<vmem>>, vector<128x1xf32>
    tpu.vector_store %arg11[%c0_28, %c0_29], %24 {strides = array<i32>} : memref<128x1xf32, #tpu.memory_space<vmem>>, vector<128x1xf32>,
    %c0_i32_30 = arith.constant 0 : i32
    %43 = arith.cmpi eq, %arg3, %c0_i32_30 : i32
    %44 = arith.extui %43 : i1 to i32
    %c0_i32_31 = arith.constant 0 : i32
    %45 = arith.cmpi ne, %44, %c0_i32_31 : i32
    scf.if %45 {
      %c0_34 = arith.constant 0 : index
      %c0_35 = arith.constant 0 : index
      %51 = vector.load %arg12[%c0_34, %c0_35] : memref<128x1xf32, #tpu.memory_space<vmem>>, vector<128x1xf32>
      %52 = tpu.reciprocal %51 {approx = true} : vector<128x1xf32> -> vector<128x1xf32>
      %53 = arith.mulf %51, %52 : vector<128x1xf32>
      %cst_36 = arith.constant 2.000000e+00 : f32
      %54 = vector.broadcast %cst_36 : f32 to vector<128x1xf32>
      %55 = arith.subf %54, %53 : vector<128x1xf32>
      %56 = arith.mulf %52, %55 : vector<128x1xf32>
      %c0_37 = arith.constant 0 : index
      %c0_38 = arith.constant 0 : index
      %57 = vector.load %arg13[%c0_37, %c0_38] : memref<128x32xf32, #tpu.memory_space<vmem>>, vector<128x32xf32>
      %58 = vector.broadcast %56 : vector<128x1xf32> to vector<128x32xf32>
      %59 = arith.mulf %57, %58 : vector<128x32xf32>
      %c0_39 = arith.constant 0 : index
      %c0_40 = arith.constant 0 : index
      %60 = vector.load %arg14[%c0_39, %c0_40] : memref<128x128xf32, #tpu.memory_space<vmem>>, vector<128x128xf32>
      %c0_41 = arith.constant 0 : index
      %c0_42 = arith.constant 0 : index
      %61 = vector.load %arg8[%c0_41, %c0_42] : memref<32x128xf32, #tpu.memory_space<vmem>>, vector<32x128xf32>
      %cst_43 = arith.constant dense<0.000000e+00> : vector<128x128xf32>
      %62 = tpu.matmul %59, %61, %cst_43 {dimension_numbers = #tpu.dot_dimension_numbers<[1], [0], [0], [1], [0, 0, 1, 1], [], []>} : vector<128x32xf32>, vector<32x128xf32>, vector<128x128xf32> -> vector<128x128xf32>
      %63 = arith.addf %60, %62 : vector<128x128xf32>
      %c0_44 = arith.constant 0 : index
      %c0_45 = arith.constant 0 : index
      %64 = vector.load %arg14[%c0_44, %c0_45] : memref<128x128xf32, #tpu.memory_space<vmem>>, vector<128x128xf32>
      tpu.vector_store %arg14[%c0_44, %c0_45], %63 {strides = array<i32>} : memref<128x128xf32, #tpu.memory_space<vmem>>, vector<128x128xf32>,
    } else {
    }
    %c3_i32 = arith.constant 3 : i32
    %46 = arith.cmpi eq, %arg2, %c3_i32 : i32
    %c0_i32_32 = arith.constant 0 : i32
    %47 = arith.cmpi eq, %arg3, %c0_i32_32 : i32
    %48 = arith.andi %46, %47 : i1
    %49 = arith.extui %48 : i1 to i32
    %c0_i32_33 = arith.constant 0 : i32
    %50 = arith.cmpi ne, %49, %c0_i32_33 : i32
    scf.if %50 {
      %c0_34 = arith.constant 0 : index
      %c0_35 = arith.constant 0 : index
      %51 = vector.load %arg14[%c0_34, %c0_35] : memref<128x128xf32, #tpu.memory_space<vmem>>, vector<128x128xf32>
      %c0_36 = arith.constant 0 : index
      %c0_37 = arith.constant 0 : index
      %c0_38 = arith.constant 0 : index
      %52 = vector.load %arg9[%c0_36, %c0_37, %c0_38] : memref<1x128x128xf32, #tpu.memory_space<vmem>>, vector<1x128x128xf32>
      %53 = vector.shape_cast %52 : vector<1x128x128xf32> to vector<128x128xf32>
      %54 = vector.shape_cast %51 : vector<128x128xf32> to vector<1x128x128xf32>
      tpu.vector_store %arg9[%c0_36, %c0_37, %c0_38], %54 {strides = array<i32>} : memref<1x128x128xf32, #tpu.memory_space<vmem>>, vector<1x128x128xf32>,
    } else {
    }
    return
  }
  func.func @transform_0(%arg0: i32, %arg1: i32, %arg2: i32, %arg3: i32) -> (i32, i32, i32) {
    %c0_i32 = arith.constant 0 : i32
    %c0_i32_0 = arith.constant 0 : i32
    return %arg0, %arg1, %c0_i32 : i32, i32, i32
  }
  func.func @transform_1(%arg0: i32, %arg1: i32, %arg2: i32, %arg3: i32) -> (i32, i32, i32) {
    %c0_i32 = arith.constant 0 : i32
    %c0_i32_0 = arith.constant 0 : i32
    return %arg0, %arg3, %c0_i32 : i32, i32, i32
  }
  func.func @transform_2(%arg0: i32, %arg1: i32, %arg2: i32, %arg3: i32) -> (i32, i32, i32) {
    %c0_i32 = arith.constant 0 : i32
    %c0_i32_0 = arith.constant 0 : i32
    return %arg0, %arg3, %c0_i32 : i32, i32, i32
  }
  func.func @transform_3(%arg0: i32, %arg1: i32, %arg2: i32, %arg3: i32) -> (i32, i32) {
    %c0_i32 = arith.constant 0 : i32
    %c0_i32_0 = arith.constant 0 : i32
    return %arg2, %c0_i32 : i32, i32
  }
  func.func @transform_4(%arg0: i32, %arg1: i32, %arg2: i32, %arg3: i32) -> (i32, i32) {
    %c0_i32 = arith.constant 0 : i32
    %c0_i32_0 = arith.constant 0 : i32
    return %arg2, %c0_i32 : i32, i32
  }
  func.func @transform_5(%arg0: i32, %arg1: i32, %arg2: i32, %arg3: i32) -> (i32, i32, i32) {
    %c0_i32 = arith.constant 0 : i32
    %c0_i32_0 = arith.constant 0 : i32
    return %arg0, %arg1, %c0_i32 : i32, i32, i32
  }
}

</mosaic_0001>

<bundles_post_ra>
// kernel: tpu_custom_call.1
= control target key start
LH: loop header
LB: loop body
LE: loop exit
PB: predicated region body
PF: predicated region fallthrough
CT: control target
= control target key end

     0   :  { %s4683_s0 = inlined_call_operand.hbm [shape: f32[2,128,128], index: 0, kind: input, shape index: {}]   ;;  %s4684_s1 = inlined_call_operand.hbm [shape: f32[2,128,128], index: 1, kind: input, shape index: {}]   ;;  %s4685_s2 = inlined_call_operand.hbm [shape: f32[2,128,128], index: 2, kind: input, shape index: {}]   ;;  %s4686_s3 = inlined_call_operand.hbm [shape: f32[128,128], index: 3, kind: input, shape index: {}]   ;;  %s4687_s4 = inlined_call_operand.hbm [shape: f32[128,128], index: 4, kind: input, shape index: {}]   ;;  %s4688_s5 = inlined_call_operand.hbm [shape: f32[2,128,128], index: 5, kind: output, shape index: {}]  }
   0x1   :  { %4722 = sst [smem:[#allocation35_spill]] %s4684_s1 }
   0x2   :  { %4723 = sst [smem:[#allocation36_spill]] %s4686_s3 }
   0x3   :  { %4724 = sst [smem:[#allocation37_spill]] %s4688_s5 }
   0x4   :  { %10 = vsyncpa [#allocation8], 0 }
   0x5   :  { %12 = vsyncpa [#allocation8 + $0x1], 0 }
   0x6   :  { %13 = vsyncpa [#allocation11], 0 }
   0x7   :  { %15 = vsyncpa [#allocation11 + $0x1], 0 }
   0x8   :  { %16 = vsyncpa [#allocation14], 0 }
   0x9   :  { %18 = vsyncpa [#allocation14 + $0x1], 0 }
   0xa   :  { %19 = vsyncpa [#allocation9], 0 }
   0xb   :  { %21 = vsyncpa [#allocation9 + $0x1], 0  ;;  %s3676_s18 = smov 0   ;;  %s3678_s19 = smov 0  }
   0xc   :  { %s3680_s20 = smov 0   ;;  %s3682_s21 = smov 0  }
   0xd   :  { %s3684_s22 = smov 0   ;;  %s3686_s23 = smov 0  }
   0xe   :  { %s3688_s24 = smov 0   ;;  %s3690_s25 = smov 0  }
   0xf   :  { %s3692_s26 = smov 0   ;;  %s3694_s27 = smov 0  }
  0x10   :  { %s3696_s28 = smov 0  }
  0x11 LB: > { %4725 = sst [smem:[#allocation21_spill]] %s3594_s19  ;;  %s3732_s29 = sadd.s32 4294967295, %s3630_s28   ;;  %s3630_s28 = sphi %s3696_s28, %s27_s28   ;;  %s3626_s27 = sphi %s3694_s27, %s4801_s27   ;;  %s3622_s26 = sphi %s3692_s26, %s4800_s26   ;;  %s3618_s25 = sphi %s3690_s25, %s4799_s25   ;;  %s3614_s24 = sphi %s3688_s24, %s4798_s24   ;;  %s3610_s23 = sphi %s3686_s23, %s4806_s23   ;;  %s3606_s22 = sphi %s3684_s22, %s4805_s22   ;;  %s3602_s21 = sphi %s3682_s21, %s4804_s21   ;;  %s3598_s20 = sphi %s3680_s20, %s4803_s20   ;;  %s3594_s19 = sphi %s3678_s19, %s4802_s19   ;;  %s3590_s18 = sphi %s3676_s18, %s4796_s18  }
  0x12   : > { %4726 = sst [smem:[#allocation22_spill]] %s3602_s21  ;;  %s2554_s30 = sadd.s32 4294967294, %s3630_s28  }
  0x13   : > { %4727 = sst [smem:[#allocation23_spill]] %s3614_s24  ;;  %p69_p0 = scmp.ne.s32.totalorder %s3610_s23, %s3606_s22 }
  0x14   : > { %4728 = sst [smem:[#allocation24_spill]] %s3618_s25  ;;  %p4697_p1 = scmp.eq.s32.totalorder %s3630_s28, 0 }
  0x15   : > { %4729 = sst [smem:[#allocation25_spill]] %s3622_s26  ;;  %p75_p2 = scmp.ne.s32.totalorder %s3606_s22, %s3602_s21 }
  0x16   : > { %4730 = sst [smem:[#allocation26_spill]] %s3626_s27  ;;  %p4696_p3 = scmp.eq.s32.totalorder %s3732_s29, 0 }
  0x17   : > { %4731 = sst [smem:[#allocation27_spill]] %s3732_s29  ;;  %p71_p4 = por %p4697_p1, %p69_p0 }
  0x18   : > { %p209_p5 = scmp.eq.s32.totalorder %s3732_s29, 7  ;;  %p3748_p6 = por %p4696_p3, %p75_p2 }
  0x19   : > { %p215_p7 = scmp.eq.s32.totalorder %s2554_s30, 7  ;;  %p4695_p10 = scmp.lt.s32.totalorder %s3630_s28, 8 }
  0x1a   : > { %s4732_s8 = scalar_select %p3748_p6, 1, 0 }
  0x1b   : > { %p3752_p8 = por %p209_p5, %p69_p0  ;;  %p3756_p9 = por %p215_p7, %p75_p2 }
  0x1c   : > { %4733 = sst [smem:[#allocation28_spill]] %s4732_s8  ;;  %s4689_s11 = sand.u32 1, %s3610_s23  }
  0x1d   : > { %s4734_s9 = scalar_select %p3752_p8, 1, 0 }
  0x1e   : > { %s4736_s10 = scalar_select %p3756_p9, 1, 0 }
  0x1f   : > { %4735 = sst [smem:[#allocation29_spill]] %s4734_s9  ;;  %s3763_s12 = sshll.u32 %s3626_s27, 11 }
  0x20   : > { %4737 = sst [smem:[#allocation30_spill]] %s4736_s10  ;;  %s3767_s13 = sshll.u32 %s4689_s11, 7 }
  0x21   : > { %p3771_p11 = pnand %p4695_p10, %p71_p4  ;;  %s4698_s15 = sand.u32 1, %s3630_s28  }
  0x22   : > { %s4739_s1 = sld [smem:[#allocation35_spill]]  ;;  %s262_s7 = scalar_lea.vmem [#allocation10], %s3767_s13 }
  0x23   : > { %s4738_s14 = scalar_select %p3771_p11, 1, 0 }
  0x24   : > { %s271_s11 = sshll.u32 %s262_s7, 4  ;;  %s3788_s6 = scalar_lea.sflag [#allocation11], %s4698_s15  ;;  %s3783_s11 = int_to_ptr.vmem [resolvable:$true] %s271_s11 }
  0x25   : > { %p3794_p0 = pneg %p3771_p11 }
  0x28   : > { %s3780_s30 = scalar_lea.hbm %s4739_s1, %s3763_s12  ;;  %s3355_s7 = scalar_lea.hbm %s4739_s1, 4096 }
  0x29   : > { %s3350_s10 = scalar_lea.hbm %s3780_s30, 2048  ;;  %p3356_p5 = scmp.lt.u32.totalorder %s3780_s30, %s4739_s1 }
  0x2a   : > { %p3351_p13 = scmp.ne.s32.totalorder %s3780_s30, %s3350_s10  ;;  %p3357_p7 = scmp.lt.u32.totalorder %s3355_s7, %s3350_s10 }
  0x2b   : > { %p3359_p3 = scmp.lt.u32.totalorder %s3350_s10, %s3780_s30 }
  0x2c   : > { %p3353_p2 = pnand %p3794_p0, %p3351_p13  ;;  %p3358_p10 = por %p3357_p7, %p3356_p5 }
  0x2e   : > { %p3354_p4 = pneg %p3353_p2  ;;  %p3360_p1 = por %p3359_p3, %p3358_p10 }
  0x30   : > { %p3361_p12 = pnand %p3360_p1, %p3354_p4 }
  0x32   : > { %3364 = shalt.err (!%p3361_p12)
}
  0x33   : > { %s3365_s15 = scalar_lea.vmem %s3783_s11, 2048  ;;  %s3632_s16 = smov [#allocation10]  }
  0x34   : > { %p3366_p13 = scmp.ne.s32.totalorder %s3783_s11, %s3365_s15  ;;  %s3370_s17 = sshll.u32 %s3632_s16, 4  ;;  %s3371_s17 = int_to_ptr.vmem [resolvable:$false] %s3370_s17 }
  0x35   : > { %s3372_s5 = scalar_lea.vmem %s3371_s17, 4096  ;;  %p3373_p8 = scmp.lt.s32.totalorder %s3783_s11, %s3371_s17 }
  0x36   : > { %p3368_p2 = pnand %p3366_p13, %p3794_p0  ;;  %p3374_p6 = scmp.lt.s32.totalorder %s3372_s5, %s3365_s15 }
  0x38   : > { %p3369_p9 = pneg %p3368_p2  ;;  %p3375_p5 = por %p3374_p6, %p3373_p8 }
  0x3a   : > { %p3376_p7 = pnand %p3375_p5, %p3369_p9 }
  0x3c   : > { %3379 = shalt.err (!%p3376_p7)
}
  0x3d   : > { %s4701_s9 = smov 128   ;;  %s4703_s10 = smov 8  }
  0x3e   : > { %3140 = dma.hbm_to_vmem [thread:$0]  (!%p3771_p11), %s3780_s30, 2048, %s3783_s11, %s3788_s6, %s4701_s9, %s4701_s9, %s4703_s10  }
  0x3f   : > { %p344_p1 = scmp.lt.s32.totalorder %s3630_s28, 9  ;;  %p4741_p3 = scmp.ge.s32.totalorder %s3630_s28, 1 }
  0x40   : > { %s45_s7 = sadd.s32 1, %s3622_s26  ;;  %s144_s16 = sadd.s32 1, %s3598_s20 }
  0x41   : > { %p3824_p6 = pnand %p4741_p3, %p344_p1  ;;  %p47_p8 = scmp.ge.s32.totalorder %s45_s7, 4 }
  0x42   : > { %p151_p9 = scmp.ne.s32.totalorder %s3598_s20, %s3594_s19  ;;  %p157_p10 = scmp.ne.s32.totalorder %s3594_s19, %s3590_s18 }
  0x43   : > { %s4742_s15 = scalar_select %p3824_p6, 1, 0 }
  0x44   : > { %s4808_s7 = smov (%p47_p8, %s45_s7), 0  ;;  %s4744_s17 = sadd.s32 1, %s3626_s27 }
  0x45   : > { %4743 = sst [smem:[#allocation31_spill]] %s4808_s7  ;;  %s4810_s17 = smov (!%p47_p8, %s4744_s17), %s3626_s27 }
  0x46   : > { %s141_s11 = ssub.s32 %s3622_s26, %s4808_s7  ;;  %p4745_p12 = scmp.eq.s32.totalorder %s3630_s28, 0 }
  0x47   : > { %p55_p13 = scmp.ge.s32.totalorder %s4810_s17, 2  ;;  %p142_p2 = scmp.eq.s32.totalorder %s141_s11, 0 }
  0x48   : > { %p3843_p4 = por %p151_p9, %p4745_p12  ;;  %p4747_p5 = scmp.eq.s32.totalorder %s3732_s29, 0 }
  0x49   : > { %s306_s5 = sand.u32 1, %s3598_s20   ;;  %s4812_s17 = smov (%p55_p13, %s4810_s17), 0 }
  0x4a   : > { %p3849_p7 = por %p157_p10, %p4747_p5  ;;  %4750 = sst [smem:[#allocation33_spill]] %s4812_s17 }
  0x4b   : > { %s3857_s9 = scalar_select %p142_p2, %s3598_s20, %s144_s16  }
  0x4c   : > { %s4748_s18 = scalar_select %p3849_p7, 1, 0 }
  0x4d   : > { %s57_s10 = ssub.s32 %s3626_s27, %s4812_s17  ;;  %s2566_s1 = sshll.u32 %s306_s5, 5 }
  0x4e   : > { %4749 = sst [smem:[#allocation32_spill]] %s4748_s18  ;;  %p60_p1 = scmp.eq.s32.totalorder %s57_s10, 0 }
  0x4f   : > { %s2637_s7 = sshll.u32 %s3622_s26, 9  ;;  %s308_s25 = scalar_lea.vmem [#allocation13], %s2566_s1 }
  0x50   : > { %s315_s24 = sshll.u32 %s308_s25, 4  ;;  %s4751_s19 = sadd.s32 1, %s3610_s23  ;;  %s3872_s24 = int_to_ptr.vmem [resolvable:$true] %s315_s24 }
  0x51   : > { %s3865_s11 = scalar_select %p60_p1, %s3610_s23, %s4751_s19  }
  0x52   : > { %s4753_s3 = sld [smem:[#allocation36_spill]]  ;;  %p4754_p3 = scmp.lt.s32.totalorder %s3630_s28, 8 }
  0x53   : > { %4752 = sst [smem:[#allocation34_spill]] %s3865_s11  ;;  %s3885_s29 = scalar_lea.hbm %s4687_s4, %s2637_s7 }
  0x54   : > { %p3878_p8 = pnand %p4754_p3, %p3843_p4  ;;  %s329_s8 = scalar_lea.vmem [#allocation15], %s2566_s1 }
  0x55   : > { %s336_s16 = sshll.u32 %s329_s8, 4  ;;  %s4756_s5 = sand.u32 1, %s3630_s28   ;;  %s3887_s16 = int_to_ptr.vmem [resolvable:$true] %s336_s16 }
  0x56   : > { %s4755_s10 = scalar_select %p3878_p8, 1, 0 }
  0x57   : > { %s3891_s17 = scalar_lea.sflag [#allocation14], %s4756_s5  ;;  %p4719_p10 = pneg %p3878_p8 }
  0x58   : > { %s3870_s18 = scalar_lea.hbm %s4753_s3, %s2637_s7  ;;  %s3385_s7 = scalar_lea.hbm %s4753_s3, 2048 }
  0x59   : > { %s3380_s30 = scalar_lea.hbm %s3870_s18, 512  ;;  %p3386_p13 = scmp.lt.u32.totalorder %s3870_s18, %s4753_s3 }
  0x5a   : > { %p3381_p9 = scmp.ne.s32.totalorder %s3870_s18, %s3380_s30  ;;  %p3387_p2 = scmp.lt.u32.totalorder %s3385_s7, %s3380_s30 }
  0x5b   : > { %p3389_p1 = scmp.lt.u32.totalorder %s3380_s30, %s3870_s18 }
  0x5c   : > { %p3383_p12 = pnand %p4719_p10, %p3381_p9  ;;  %p3388_p5 = por %p3387_p2, %p3386_p13 }
  0x5e   : > { %p3384_p4 = pneg %p3383_p12  ;;  %p3390_p3 = por %p3389_p1, %p3388_p5 }
  0x60   : > { %p3391_p7 = pnand %p3390_p3, %p3384_p4 }
  0x62   : > { %3394 = shalt.err (!%p3391_p7)
}
  0x63   : > { %s3395_s8 = scalar_lea.vmem %s3872_s24, 512  ;;  %s3635_s5 = smov [#allocation13]  }
  0x64   : > { %p3396_p9 = scmp.ne.s32.totalorder %s3872_s24, %s3395_s8  ;;  %s3400_s25 = sshll.u32 %s3635_s5, 4  ;;  %s3401_s25 = int_to_ptr.vmem [resolvable:$false] %s3400_s25 }
  0x65   : > { %s3402_s27 = scalar_lea.vmem %s3401_s25, 1024  ;;  %p3403_p11 = scmp.lt.s32.totalorder %s3872_s24, %s3401_s25 }
  0x66   : > { %p3398_p12 = pnand %p3396_p9, %p4719_p10  ;;  %p3404_p13 = scmp.lt.s32.totalorder %s3402_s27, %s3395_s8 }
  0x68   : > { %p3399_p6 = pneg %p3398_p12  ;;  %p3405_p2 = por %p3404_p13, %p3403_p11 }
  0x6a   : > { %p3406_p5 = pnand %p3405_p2, %p3399_p6 }
  0x6c   : > { %3409 = shalt.err (!%p3406_p5)
}
  0x6d   : > { %s4757_s30 = smov 8   ;;  %s4758_s19 = smov 128  }
  0x6e   : > { %3146 = dma.hbm_to_vmem [thread:$0]  (!%p3878_p8), %s3870_s18, 512, %s3872_s24, %s3891_s17, %s4758_s19, %s4758_s19, %s4757_s30  }
  0x6f   : > { %s3926_s8 = scalar_lea.hbm %s4683_s0, %s3763_s12  ;;  %s239_s5 = scalar_lea.vmem [#allocation7], %s3767_s13 }
  0x70   : > { %s248_s25 = sshll.u32 %s239_s5, 4  ;;  %s4759_s27 = sand.u32 1, %s3610_s23   ;;  %s3929_s25 = int_to_ptr.vmem [resolvable:$true] %s248_s25 }
  0x71   : > { %s3933_s3 = scalar_lea.sflag [#allocation8], %s4759_s27  ;;  %s3410_s26 = scalar_lea.hbm %s3926_s8, 2048 }
  0x72   : > { %p3411_p11 = scmp.ne.s32.totalorder %s3926_s8, %s3410_s26  ;;  %s3415_s7 = scalar_lea.hbm %s4683_s0, 4096 }
  0x73   : > { %p3416_p4 = scmp.lt.u32.totalorder %s3926_s8, %s4683_s0  ;;  %p3417_p1 = scmp.lt.u32.totalorder %s3415_s7, %s3410_s26 }
  0x74   : > { %p3413_p6 = pnand %p3411_p11, %p3794_p0  ;;  %p3419_p9 = scmp.lt.u32.totalorder %s3410_s26, %s3926_s8 }
  0x75   : > { %p3418_p3 = por %p3417_p1, %p3416_p4 }
  0x76   : > { %p3414_p7 = pneg %p3413_p6 }
  0x77   : > { %p3420_p12 = por %p3419_p9, %p3418_p3 }
  0x79   : > { %p3421_p13 = pnand %p3420_p12, %p3414_p7 }
  0x7b   : > { %3424 = shalt.err (!%p3421_p13)
}
  0x7c   : > { %s3425_s5 = scalar_lea.vmem %s3929_s25, 2048  ;;  %s3636_s27 = smov [#allocation7]  }
  0x7d   : > { %p3426_p2 = scmp.ne.s32.totalorder %s3929_s25, %s3425_s5  ;;  %s3430_s24 = sshll.u32 %s3636_s27, 4  ;;  %s3431_s24 = int_to_ptr.vmem [resolvable:$false] %s3430_s24 }
  0x7e   : > { %s3432_s11 = scalar_lea.vmem %s3431_s24, 4096  ;;  %p3433_p6 = scmp.lt.s32.totalorder %s3929_s25, %s3431_s24 }
  0x7f   : > { %p3428_p5 = pnand %p3426_p2, %p3794_p0  ;;  %p3434_p10 = scmp.lt.s32.totalorder %s3432_s11, %s3425_s5 }
  0x81   : > { %p3429_p11 = pneg %p3428_p5  ;;  %p3435_p4 = por %p3434_p10, %p3433_p6 }
  0x83   : > { %p3436_p1 = pnand %p3435_p4, %p3429_p11 }
  0x85   : > { %3439 = shalt.err (!%p3436_p1)
}
  0x86   : > { %p4760_p7 = scmp.ne.s32.totalorder %s4738_s14, 0  ;;  %s3964_s7 = scalar_lea.hbm %s4685_s2, %s3763_s12 }
  0x87   : > { %s285_s1 = scalar_lea.vmem [#allocation12], %s3767_s13  ;;  %s3440_s27 = scalar_lea.hbm %s3964_s7, 2048 }
  0x88   : > { %3137 = dma.hbm_to_vmem [thread:$0]  (!%p4760_p7), %s3926_s8, 2048, %s3929_s25, %s3933_s3, %s4758_s19, %s4758_s19, %s4757_s30  }
  0x89   : > { %s294_s5 = sshll.u32 %s285_s1, 4  ;;  %p3441_p10 = scmp.ne.s32.totalorder %s3964_s7, %s3440_s27  ;;  %s3967_s5 = int_to_ptr.vmem [resolvable:$true] %s294_s5 }
  0x8a   : > { %s3445_s8 = scalar_lea.hbm %s4685_s2, 4096  ;;  %p3446_p12 = scmp.lt.u32.totalorder %s3964_s7, %s4685_s2 }
  0x8b   : > { %p3443_p3 = pnand %p3441_p10, %p3794_p0  ;;  %p3447_p13 = scmp.lt.u32.totalorder %s3445_s8, %s3440_s27 }
  0x8c   : > { %p3449_p5 = scmp.lt.u32.totalorder %s3440_s27, %s3964_s7 }
  0x8d   : > { %p3444_p9 = pneg %p3443_p3  ;;  %p3448_p2 = por %p3447_p13, %p3446_p12 }
  0x8f   : > { %p3450_p11 = por %p3449_p5, %p3448_p2 }
  0x91   : > { %p3451_p6 = pnand %p3450_p11, %p3444_p9 }
  0x93   : > { %3454 = shalt.err (!%p3451_p6)
}
  0x94   : > { %s3455_s13 = scalar_lea.vmem %s3967_s5, 2048  ;;  %s3637_s11 = smov [#allocation12]  }
  0x95   : > { %p3456_p4 = scmp.ne.s32.totalorder %s3967_s5, %s3455_s13  ;;  %s3460_s26 = sshll.u32 %s3637_s11, 4  ;;  %s3461_s26 = int_to_ptr.vmem [resolvable:$false] %s3460_s26 }
  0x96   : > { %s3462_s18 = scalar_lea.vmem %s3461_s26, 4096  ;;  %p3463_p3 = scmp.lt.s32.totalorder %s3967_s5, %s3461_s26 }
  0x97   : > { %p3458_p1 = pnand %p3456_p4, %p3794_p0  ;;  %p3464_p8 = scmp.lt.s32.totalorder %s3462_s18, %s3455_s13 }
  0x99   : > { %p3459_p10 = pneg %p3458_p1  ;;  %p3465_p12 = por %p3464_p8, %p3463_p3 }
  0x9b   : > { %p3466_p13 = pnand %p3465_p12, %p3459_p10 }
  0x9d   : > { %3469 = shalt.err (!%p3466_p13)
}
  0x9e   : > { %3143 = dma.hbm_to_vmem [thread:$0]  (!%p4760_p7), %s3964_s7, 2048, %s3967_s5, %s3788_s6, %s4758_s19, %s4758_s19, %s4757_s30  }
  0x9f   : > { %s3470_s21 = scalar_lea.hbm %s3885_s29, 512  ;;  %p4761_p9 = scmp.ne.s32.totalorder %s4755_s10, 0 }
  0xa0   : > { %p3471_p0 = scmp.ne.s32.totalorder %s3885_s29, %s3470_s21  ;;  %s3475_s27 = scalar_lea.hbm %s4687_s4, 2048 }
  0xa1   : > { %p4762_p8 = pneg %p4761_p9  ;;  %p3476_p11 = scmp.lt.u32.totalorder %s3885_s29, %s4687_s4 }
  0xa2   : > { %p3477_p6 = scmp.lt.u32.totalorder %s3475_s27, %s3470_s21  ;;  %p3479_p1 = scmp.lt.u32.totalorder %s3470_s21, %s3885_s29 }
  0xa3   : > { %p3473_p2 = pnand %p3471_p0, %p4762_p8 }
  0xa4   : > { %p3478_p4 = por %p3477_p6, %p3476_p11 }
  0xa5   : > { %p3474_p5 = pneg %p3473_p2 }
  0xa6   : > { %p3480_p10 = por %p3479_p1, %p3478_p4 }
  0xa8   : > { %p3481_p3 = pnand %p3480_p10, %p3474_p5 }
  0xaa   : > { %3484 = shalt.err (!%p3481_p3)
}
  0xab   : > { %s3485_s6 = scalar_lea.vmem %s3887_s16, 512  ;;  %p4763_p12 = pmov %p4762_p8 }
  0xac   : > { %p3486_p7 = scmp.ne.s32.totalorder %s3887_s16, %s3485_s6  ;;  %s3638_s7 = smov [#allocation15]  }
  0xad   : > { %s3490_s5 = sshll.u32 %s3638_s7, 4  ;;  %s3491_s5 = int_to_ptr.vmem [resolvable:$false] %s3490_s5 }
  0xae   : > { %p3488_p13 = pnand %p3486_p7, %p4763_p12  ;;  %s3492_s8 = scalar_lea.vmem %s3491_s5, 1024 }
  0xaf   : > { %p3493_p8 = scmp.lt.s32.totalorder %s3887_s16, %s3491_s5  ;;  %p3494_p2 = scmp.lt.s32.totalorder %s3492_s8, %s3485_s6 }
  0xb0   : > { %p3489_p0 = pneg %p3488_p13 }
  0xb1   : > { %p3495_p11 = por %p3494_p2, %p3493_p8 }
  0xb3   : > { %p3496_p6 = pnand %p3495_p11, %p3489_p0 }
  0xb5   : > { %3499 = shalt.err (!%p3496_p6)
}
  0xb6   : > { %3149 = dma.hbm_to_vmem [thread:$0]  (!%p4761_p9), %s3885_s29, 512, %s3887_s16, %s3891_s17, %s4758_s19, %s4758_s19, %s4757_s30  }
  0xb7   : > { %p4764_p5 = scmp.ne.s32.totalorder %s4742_s15, 0 }
  0xb8   : > { %s4765_s25 = sld [smem:[#allocation28_spill]] (!%p4764_p5)  ;;  %s4024_s12 = sand.u32 (!%p4764_p5), 1, %s3606_s22  }
  0xb9   : > { %348 = sbr.rel (%p4764_p5) target bundleno = 1634 (0x662), region = 40  ;;  %s2573_s13 = sshll.u32 (!%p4764_p5), %s4024_s12, 7 }
  0xba   : > { %s351_s11 = scalar_lea.sflag (!%p4764_p5), [#allocation8], %s4024_s12  ;;  %s4028_s26 = scalar_lea.vmem (!%p4764_p5), [#allocation7], %s2573_s13 }
  0xbe   : > { %p4766_p4 = scmp.ne.s32.totalorder (!%p4764_p5), %s4765_s25, 0 }
  0xc0   : > { %3573 = dma.done.wait (%p4766_p4), %s351_s11, 2048  }
  0xc1   : > { %3575 = vsyncadd (%p4766_p4), %s351_s11, 4294965248  ;;  %s4767_s10 = sld [smem:[#allocation27_spill]]  ;;  %s4035_s29 = scalar_lea.vmem [#allocation10], %s2573_s13 }
  0xc7   : > { %s359_s17 = sand.u32 1, %s4767_s10  }
  0xc8   : > { %s360_s15 = scalar_lea.sflag [#allocation11], %s359_s17 }
  0xc9   : > { %3577 = dma.done.wait (%p4766_p4), %s360_s15, 4096  }
  0xca   : > { %3579 = vsyncadd (%p4766_p4), %s360_s15, 4294963200  ;;  %s4768_s16 = sld [smem:[#allocation21_spill]]  ;;  %s4769_s30 = sld [smem:[#allocation32_spill]] }
  0xcb   : > { %s4042_s21 = scalar_lea.vmem [#allocation12], %s2573_s13  ;;  %s378_s1 = scalar_lea.sflag [#allocation14], %s359_s17 }
  0xd0   : > { %s379_s19 = sand.u32 1, %s4768_s16   ;;  %p4770_p9 = scmp.ne.s32.totalorder %s4769_s30, 0 }
  0xd1   : > { %s2576_s18 = sshll.u32 %s379_s19, 5 }
  0xd2   : > { %s381_s14 = scalar_lea.vmem [#allocation13], %s2576_s18 }
  0xd3   : > { %3581 = dma.done.wait (%p4770_p9), %s378_s1, 1024  }
  0xd4   : > { %3583 = vsyncadd (%p4770_p9), %s378_s1, 4294966272  ;;  %s4771_s27 = sld [smem:[#allocation23_spill]]  ;;  %v443_v0 = vld [vmem:[%s381_s14] sm:$0xff]  ;;  %v444_v1 = vld [vmem:[%s381_s14 + $0x8] sm:$0xff]  ;;  %s4049_s24 = scalar_lea.vmem [#allocation15], %s2576_s18 }
  0xd5   : > { %v445_v2 = vld [vmem:[%s381_s14 + $0x10] sm:$0xff]  ;;  %v446_v3 = vld [vmem:[%s381_s14 + $0x18] sm:$0xff]  ;;  %s4051_s3 = scalar_lea.vmem [#allocation16], %s2573_s13 }
  0xda   : > { %p447_p1 = scmp.eq.s32.totalorder %s4771_s27, 0 }
  0xdb   : > { %v3639_v4 = vmov (%p447_p1), 0.0  }
  0xdc   : > { %452 = sbr.rel (!%p447_p1) target bundleno = 228 (0xe4), region = 64  ;;  %453 = vst [vmem:[#allocation6] sm:$0xff] (%p447_p1), %v3639_v4  ;;  %454 = vst [vmem:[#allocation6 + $0x8] sm:$0xff] (%p447_p1), %v3639_v4 }
  0xdd   : > { %455 = vst [vmem:[#allocation6 + $0x10] sm:$0xff] (%p447_p1), %v3639_v4  ;;  %456 = vst [vmem:[#allocation6 + $0x18] sm:$0xff] (%p447_p1), %v3639_v4 }
  0xde   : > { %457 = vst [vmem:[#allocation6 + $0x20] sm:$0xff] (%p447_p1), %v3639_v4  ;;  %458 = vst [vmem:[#allocation6 + $0x28] sm:$0xff] (%p447_p1), %v3639_v4 }
  0xdf   : > { %459 = vst [vmem:[#allocation6 + $0x30] sm:$0xff] (%p447_p1), %v3639_v4  ;;  %460 = vst [vmem:[#allocation6 + $0x38] sm:$0xff] (%p447_p1), %v3639_v4 }
  0xe0   : > { %461 = vst [vmem:[#allocation6 + $0x40] sm:$0xff] (%p447_p1), %v3639_v4  ;;  %462 = vst [vmem:[#allocation6 + $0x48] sm:$0xff] (%p447_p1), %v3639_v4 }
  0xe1   : > { %463 = vst [vmem:[#allocation6 + $0x50] sm:$0xff] (%p447_p1), %v3639_v4  ;;  %464 = vst [vmem:[#allocation6 + $0x58] sm:$0xff] (%p447_p1), %v3639_v4 }
  0xe2   : > { %465 = vst [vmem:[#allocation6 + $0x60] sm:$0xff] (%p447_p1), %v3639_v4  ;;  %466 = vst [vmem:[#allocation6 + $0x68] sm:$0xff] (%p447_p1), %v3639_v4 }
  0xe3   : > { %467 = vst [vmem:[#allocation6 + $0x70] sm:$0xff] %v3639_v4  ;;  %468 = vst [vmem:[#allocation6 + $0x78] sm:$0xff] %v3639_v4 }
  0xe4 PF: > { %v3014_v5 = vpack.c.bf16 %v444_v1, %v443_v0  ;;  %v3018_v6 = vpack.c.bf16 %v446_v3, %v445_v2  ;;  %v699_v7 = vld [vmem:[%s4035_s29] sm:$0xff]  ;;  %v700_v9 = vld [vmem:[%s4035_s29 + $0x8] sm:$0xff]  ;;  %v701_v11 = vld [vmem:[%s4035_s29 + $0x10] sm:$0xff]  ;;  %vm505_vm0 = vcmask 261120   ;;  %vm472_vm2 = vcmask 7168   ;;  %s4788_s6 = sld [smem:[#allocation23_spill]] }
  0xe5   : > { %2822 = vmatprep.mubr.f32.mxu1 %v699_v7  ;;  %v522_v8 = vld [vmem:[%s4028_s26] sm:$0xff]  ;;  %v523_v10 = vld [vmem:[%s4028_s26 + $0x8] sm:$0xff]  ;;  %v524_v12 = vld [vmem:[%s4028_s26 + $0x10] sm:$0xff] }
  0xe6   : > { %3023 = vmatprep.subr.bf16.mxu1 %v3014_v5  ;;  %3015 = vmatprep.subr.bf16.mxu0 %v3014_v5  ;;  %v702_v13 = vld [vmem:[%s4035_s29 + $0x18] sm:$0xff]  ;;  %v703_v15 = vld [vmem:[%s4035_s29 + $0x20] sm:$0xff]  ;;  %v704_v17 = vld [vmem:[%s4035_s29 + $0x28] sm:$0xff] }
  0xe7   : > { %3025 = vmatpush3.bf16.xpose.msra.mxu1 %v3014_v5  ;;  %3017 = vmatpush3.bf16.xpose.msra.mxu0 %v3014_v5  ;;  %v525_v14 = vld [vmem:[%s4028_s26 + $0x18] sm:$0xff]  ;;  %v526_v16 = vld [vmem:[%s4028_s26 + $0x20] sm:$0xff]  ;;  %v527_v18 = vld [vmem:[%s4028_s26 + $0x28] sm:$0xff] }
  0xe8   : > { %3027 = vmatprep.subr.bf16.mxu1 %v3018_v6  ;;  %3019 = vmatprep.subr.bf16.mxu0 %v3018_v6  ;;  %v705_v19 = vld [vmem:[%s4035_s29 + $0x30] sm:$0xff]  ;;  %v706_v21 = vld [vmem:[%s4035_s29 + $0x38] sm:$0xff]  ;;  %v707_v23 = vld [vmem:[%s4035_s29 + $0x40] sm:$0xff] }
  0xe9   : > { %2790 = vmatprep.mubr.f32.mxu0 %v522_v8  ;;  %v528_v20 = vld [vmem:[%s4028_s26 + $0x30] sm:$0xff]  ;;  %v529_v22 = vld [vmem:[%s4028_s26 + $0x38] sm:$0xff]  ;;  %v530_v24 = vld [vmem:[%s4028_s26 + $0x40] sm:$0xff] }
  0xea   : > { %v708_v25 = vld [vmem:[%s4035_s29 + $0x48] sm:$0xff]  ;;  %v709_v27 = vld [vmem:[%s4035_s29 + $0x50] sm:$0xff]  ;;  %v710_v29 = vld [vmem:[%s4035_s29 + $0x58] sm:$0xff]  ;;  %p2312_p10 = scmp.eq.s32.totalorder %s4788_s6, 3 }
  0xeb   : > { %v531_v26 = vld [vmem:[%s4028_s26 + $0x48] sm:$0xff]  ;;  %v532_v28 = vld [vmem:[%s4028_s26 + $0x50] sm:$0xff]  ;;  %v533_v30 = vld [vmem:[%s4028_s26 + $0x58] sm:$0xff] }
  0xec   : > { %v711_v31 = vld [vmem:[%s4035_s29 + $0x60] sm:$0xff]  ;;  %v712_v33 = vld [vmem:[%s4035_s29 + $0x68] sm:$0xff]  ;;  %v713_v35 = vld [vmem:[%s4035_s29 + $0x70] sm:$0xff] }
  0xed   : > { %v534_v32 = vld [vmem:[%s4028_s26 + $0x60] sm:$0xff]  ;;  %v535_v34 = vld [vmem:[%s4028_s26 + $0x68] sm:$0xff]  ;;  %v536_v36 = vld [vmem:[%s4028_s26 + $0x70] sm:$0xff] }
  0xee   : > { %v714_v37 = vld [vmem:[%s4035_s29 + $0x78] sm:$0xff]  ;;  %vm4087_vm1 = vmpackc.low %vm505_vm0, %vm505_vm0  ;;  %v725_v42 = vld [vmem:[%s4042_s21 + $0x50] sm:$0xff] }
  0xef   : > { %3029 = vmatpush3.bf16.xpose.msra.mxu1 %v3018_v6  ;;  %3021 = vmatpush3.bf16.xpose.msra.mxu0 %v3018_v6  ;;  %v537_v38 = vld [vmem:[%s4028_s26 + $0x78] sm:$0xff] }
  0xf6   : > { %2823 = vmatmul.mubr.f32.vlgmr.msra.gmra.mrb[0].mxu1 %v700_v9  ;;  %2791 = vmatmul.mubr.f32.vlgmr.msra.gmra.mrb[0].mxu0 %v523_v10 }
  0xf7   : > { %2825 = vmatprep.mubr.f32.mxu1 %v701_v11  ;;  %2793 = vmatprep.mubr.f32.mxu0 %v524_v12 }
  0xfa   : > { %2826 = vmatmul.mubr.f32.gmra.mrb[2].mxu1 %v702_v13  ;;  %2794 = vmatmul.mubr.f32.gmra.mrb[2].mxu0 %v525_v14 }
  0xfb   : > { %2828 = vmatprep.mubr.f32.mxu1 %v703_v15  ;;  %2796 = vmatprep.mubr.f32.mxu0 %v526_v16 }
  0xfe   : > { %2829 = vmatmul.mubr.f32.gmra.mrb[4].mxu1 %v704_v17  ;;  %2797 = vmatmul.mubr.f32.gmra.mrb[4].mxu0 %v527_v18 }
  0xff   : > { %2831 = vmatprep.mubr.f32.mxu1 %v705_v19  ;;  %2799 = vmatprep.mubr.f32.mxu0 %v528_v20 }
 0x102   : > { %2832 = vmatmul.mubr.f32.gmra.mrb[6].mxu1 %v706_v21  ;;  %2800 = vmatmul.mubr.f32.gmra.mrb[6].mxu0 %v529_v22 }
 0x103   : > { %2834 = vmatprep.mubr.f32.mxu1 %v707_v23  ;;  %2802 = vmatprep.mubr.f32.mxu0 %v530_v24 }
 0x106   : > { %2835 = vmatmul.mubr.f32.gmra.mrb[8].mxu1 %v708_v25  ;;  %2803 = vmatmul.mubr.f32.gmra.mrb[8].mxu0 %v531_v26 }
 0x107   : > { %2837 = vmatprep.mubr.f32.mxu1 %v709_v27  ;;  %2805 = vmatprep.mubr.f32.mxu0 %v532_v28 }
 0x10a   : > { %2838 = vmatmul.mubr.f32.gmra.mrb[10].mxu1 %v710_v29  ;;  %2806 = vmatmul.mubr.f32.gmra.mrb[10].mxu0 %v533_v30 }
 0x10b   : > { %2840 = vmatprep.mubr.f32.mxu1 %v711_v31  ;;  %2808 = vmatprep.mubr.f32.mxu0 %v534_v32  ;;  %v715_v32 = vld [vmem:[%s4042_s21] sm:$0xff] }
 0x10e   : > { %2841 = vmatmul.mubr.f32.gmra.mrb[12].mxu1 %v712_v33  ;;  %2809 = vmatmul.mubr.f32.gmra.mrb[12].mxu0 %v535_v34  ;;  %v716_v33 = vld [vmem:[%s4042_s21 + $0x8] sm:$0xff]  ;;  %v717_v34 = vld [vmem:[%s4042_s21 + $0x10] sm:$0xff] }
 0x10f   : > { %2843 = vmatprep.mubr.f32.mxu1 %v713_v35  ;;  %2811 = vmatprep.mubr.f32.mxu0 %v536_v36  ;;  %v718_v35 = vld [vmem:[%s4042_s21 + $0x18] sm:$0xff]  ;;  %v719_v36 = vld [vmem:[%s4042_s21 + $0x20] sm:$0xff] }
 0x112   : > { %2844 = vmatmul.mubr.f32.gmra.mrb[14].mxu1 %v714_v37  ;;  %2812 = vmatmul.mubr.f32.gmra.mrb[14].mxu0 %v537_v38  ;;  %v720_v37 = vld [vmem:[%s4042_s21 + $0x28] sm:$0xff]  ;;  %v721_v38 = vld [vmem:[%s4042_s21 + $0x30] sm:$0xff] }
 0x113   : > { %2846 = vmatprep.mubr.f32.mxu1 %v715_v32 }
 0x116   : > { %2847 = vmatmul.mubr.f32.gmra.mrb[16].mxu1 %v716_v33 }
 0x117   : > { %2849 = vmatprep.mubr.f32.mxu1 %v717_v34 }
 0x11a   : > { %2850 = vmatmul.mubr.f32.gmra.mrb[18].mxu1 %v718_v35 }
 0x11b   : > { %2852 = vmatprep.mubr.f32.mxu1 %v719_v36 }
 0x11e   : > { %2853 = vmatmul.mubr.f32.gmra.mrb[20].mxu1 %v720_v37 }
 0x11f   : > { %2855 = vmatprep.mubr.f32.mxu1 %v721_v38 }
 0x1c9   : > { %v2824_v39 = vpop.f32.mrb[0].mxu1  ;;  %v2792_v40 = vpop.f32.mrb[0].mxu0 }
 0x1ca   : > { %v797_v41 = vpop.f32.mrb[1].mxu1  ;;  %684 = vst.msk [vmem:[#allocation2 + $0x8] sm:$0xff] %vm505_vm0, %v2792_v40  ;;  %v604_v43 = vpop.f32.mrb[1].mxu0  ;;  %v723_v40 = vld [vmem:[%s4042_s21 + $0x40] sm:$0xff] }
 0x1cb   : > { %v3030_v44 = vpack.c.bf16 %v2824_v39, %v797_v41  ;;  %683 = vst.msk [vmem:[#allocation2] sm:$0xff] %vm505_vm0, %v604_v43  ;;  %v722_v39 = vld [vmem:[%s4042_s21 + $0x38] sm:$0xff]  ;;  %v724_v41 = vld [vmem:[%s4042_s21 + $0x48] sm:$0xff] }
 0x1cc   : > { %2856 = vmatmul.mubr.f32.gmra.mrb[22].mxu1 %v722_v39  ;;  %v726_v43 = vld [vmem:[%s4042_s21 + $0x58] sm:$0xff] }
 0x1cd   : > { %3032 = vmatprep.subr.msk.bf16.mxu0 %vm4087_vm1, %v3030_v44  ;;  %v2827_v45 = vpop.f32.mrb[2].mxu1  ;;  %v2795_v46 = vpop.f32.mrb[2].mxu0  ;;  %2858 = vmatprep.mubr.f32.mxu1 %v723_v40 }
 0x1ce   : > { %3035 = vmatpush3.bf16.xpose.msk.msra.mxu0 %vm4087_vm1, %v3030_v44  ;;  %v807_v47 = vpop.f32.mrb[3].mxu1  ;;  %686 = vst.msk [vmem:[#allocation2 + $0x18] sm:$0xff] %vm505_vm0, %v2795_v46  ;;  %v614_v48 = vpop.f32.mrb[3].mxu0  ;;  %v727_v44 = vld [vmem:[%s4042_s21 + $0x60] sm:$0xff]  ;;  %v729_v46 = vld [vmem:[%s4042_s21 + $0x70] sm:$0xff] }
 0x1cf   : > { %v3036_v49 = vpack.c.bf16 %v2827_v45, %v807_v47  ;;  %685 = vst.msk [vmem:[#allocation2 + $0x10] sm:$0xff] %vm505_vm0, %v614_v48  ;;  %v728_v45 = vld [vmem:[%s4042_s21 + $0x68] sm:$0xff]  ;;  %v730_v47 = vld [vmem:[%s4042_s21 + $0x78] sm:$0xff] }
 0x1d0   : > { %2859 = vmatmul.mubr.f32.gmra.mrb[24].mxu1 %v724_v41 }
 0x1d1   : > { %3038 = vmatprep.subr.msk.bf16.mxu0 %vm4087_vm1, %v3036_v49  ;;  %v2830_v50 = vpop.f32.mrb[4].mxu1  ;;  %v2798_v51 = vpop.f32.mrb[4].mxu0  ;;  %v957_v18 = vld [vmem:[#allocation2 + $0x8] sm:$0xff]  ;;  %2861 = vmatprep.mubr.f32.mxu1 %v725_v42 }
 0x1d2   : > { %v817_v52 = vpop.f32.mrb[5].mxu1  ;;  %v956_v53 = vld [vmem:[#allocation2] sm:$0xff]  ;;  %688 = vst.msk [vmem:[#allocation2 + $0x28] sm:$0xff] %vm505_vm0, %v2798_v51  ;;  %v624_v54 = vpop.f32.mrb[5].mxu0 }
 0x1d3   : > { %v3042_v55 = vpack.c.bf16 %v2830_v50, %v817_v52  ;;  %2902 = vmatprep.mubr.msk.f32.mxu0 %vm505_vm0, %v956_v53  ;;  %687 = vst.msk [vmem:[#allocation2 + $0x20] sm:$0xff] %vm505_vm0, %v624_v54 }
 0x1d4   : > { %2862 = vmatmul.mubr.f32.gmra.mrb[26].mxu1 %v726_v43 }
 0x1d5   : > { %v2833_v56 = vpop.f32.mrb[6].mxu1  ;;  %v2801_v57 = vpop.f32.mrb[6].mxu0  ;;  %v959_v19 = vld [vmem:[#allocation2 + $0x18] sm:$0xff]  ;;  %2864 = vmatprep.mubr.f32.mxu1 %v727_v44 }
 0x1d6   : > { %3041 = vmatpush3.bf16.xpose.msk.msra.mxu0 %vm4087_vm1, %v3036_v49  ;;  %v827_v58 = vpop.f32.mrb[7].mxu1  ;;  %690 = vst.msk [vmem:[#allocation2 + $0x38] sm:$0xff] %vm505_vm0, %v2801_v57  ;;  %v634_v59 = vpop.f32.mrb[7].mxu0  ;;  %v958_v17 = vld [vmem:[#allocation2 + $0x10] sm:$0xff] }
 0x1d7   : > { %3044 = vmatprep.subr.msk.bf16.mxu0 %vm4087_vm1, %v3042_v55  ;;  %v3048_v60 = vpack.c.bf16 %v2833_v56, %v827_v58  ;;  %689 = vst.msk [vmem:[#allocation2 + $0x30] sm:$0xff] %vm505_vm0, %v634_v59  ;;  %v3640_v59 = vmov -inf  }
 0x1d8   : > { %2865 = vmatmul.mubr.f32.gmra.mrb[28].mxu1 %v728_v45  ;;  %473 = vst.msk [vmem:[#allocation3] sm:$0xff] %vm472_vm2, %v3640_v59  ;;  %474 = vst.msk [vmem:[#allocation3 + $0x8] sm:$0xff] %vm472_vm2, %v3640_v59 }
 0x1d9   : > { %v2836_v61 = vpop.f32.mrb[8].mxu1  ;;  %v2804_v62 = vpop.f32.mrb[8].mxu0  ;;  %v961_v21 = vld [vmem:[#allocation2 + $0x28] sm:$0xff]  ;;  %2867 = vmatprep.mubr.f32.mxu1 %v729_v46  ;;  %475 = vst.msk [vmem:[#allocation3 + $0x10] sm:$0xff] %vm472_vm2, %v3640_v59  ;;  %476 = vst.msk [vmem:[#allocation3 + $0x18] sm:$0xff] %vm472_vm2, %v3640_v59 }
 0x1da   : > { %v837_v63 = vpop.f32.mrb[9].mxu1  ;;  %692 = vst.msk [vmem:[#allocation2 + $0x48] sm:$0xff] %vm505_vm0, %v2804_v62  ;;  %v644_v0 = vpop.f32.mrb[9].mxu0  ;;  %v960_v20 = vld [vmem:[#allocation2 + $0x20] sm:$0xff] }
 0x1db   : > { %v3054_v1 = vpack.c.bf16 %v2836_v61, %v837_v63  ;;  %691 = vst.msk [vmem:[#allocation2 + $0x40] sm:$0xff] %vm505_vm0, %v644_v0 }
 0x1dc   : > { %2868 = vmatmul.mubr.f32.gmra.mrb[30].mxu1 %v730_v47  ;;  %477 = vst.msk [vmem:[#allocation3 + $0x20] sm:$0xff] %vm472_vm2, %v3640_v59  ;;  %478 = vst.msk [vmem:[#allocation3 + $0x28] sm:$0xff] %vm472_vm2, %v3640_v59 }
 0x1dd   : > { %v2839_v2 = vpop.f32.mrb[10].mxu1  ;;  %v2807_v3 = vpop.f32.mrb[10].mxu0  ;;  %v963_v23 = vld [vmem:[#allocation2 + $0x38] sm:$0xff]  ;;  %479 = vst.msk [vmem:[#allocation3 + $0x30] sm:$0xff] %vm472_vm2, %v3640_v59  ;;  %480 = vst.msk [vmem:[#allocation3 + $0x38] sm:$0xff] %vm472_vm2, %v3640_v59 }
 0x1de   : > { %3047 = vmatpush3.bf16.xpose.msk.msra.mxu0 %vm4087_vm1, %v3042_v55  ;;  %v847_v4 = vpop.f32.mrb[11].mxu1  ;;  %694 = vst.msk [vmem:[#allocation2 + $0x58] sm:$0xff] %vm505_vm0, %v2807_v3  ;;  %v654_v5 = vpop.f32.mrb[11].mxu0  ;;  %v962_v22 = vld [vmem:[#allocation2 + $0x30] sm:$0xff] }
 0x1df   : > { %3050 = vmatprep.subr.msk.bf16.mxu0 %vm4087_vm1, %v3048_v60  ;;  %v3060_v6 = vpack.c.bf16 %v2839_v2, %v847_v4  ;;  %693 = vst.msk [vmem:[#allocation2 + $0x50] sm:$0xff] %vm505_vm0, %v654_v5  ;;  %v3641_v5 = vmov 0   ;;  %v4267_v32 = vld [vmem:[#allocation3] sm:$0xff]  ;;  %v4274_v36 = vld [vmem:[#allocation3 + $0x8] sm:$0xff] }
 0x1e0   : > { %481 = vst.msk [vmem:[#allocation3 + $0x40] sm:$0xff] %vm472_vm2, %v3640_v59  ;;  %482 = vst.msk [vmem:[#allocation3 + $0x48] sm:$0xff] %vm472_vm2, %v3640_v59  ;;  %3252 = vset.pattern.permute.xlu0 %v3641_v5  ;;  %3253 = vset.pattern.permute.xlu1 %v3641_v5  ;;  %v4272_v35 = vld [vmem:[#allocation3 + $0x18] sm:$0xff]  ;;  %v4287_v44 = vld [vmem:[#allocation3 + $0x10] sm:$0xff] }
 0x1e1   : > { %v2842_v7 = vpop.f32.mrb[12].mxu1  ;;  %v2810_v8 = vpop.f32.mrb[12].mxu0  ;;  %v965_v25 = vld [vmem:[#allocation2 + $0x48] sm:$0xff]  ;;  %483 = vst.msk [vmem:[#allocation3 + $0x50] sm:$0xff] %vm472_vm2, %v3640_v59  ;;  %484 = vst.msk [vmem:[#allocation3 + $0x58] sm:$0xff] %vm472_vm2, %v3640_v59 }
 0x1e2   : > { %v857_v9 = vpop.f32.mrb[13].mxu1  ;;  %696 = vst.msk [vmem:[#allocation2 + $0x68] sm:$0xff] %vm505_vm0, %v2810_v8  ;;  %v664_v10 = vpop.f32.mrb[13].mxu0  ;;  %v964_v24 = vld [vmem:[#allocation2 + $0x40] sm:$0xff] }
 0x1e3   : > { %v3066_v11 = vpack.c.bf16 %v2842_v7, %v857_v9  ;;  %695 = vst.msk [vmem:[#allocation2 + $0x60] sm:$0xff] %vm505_vm0, %v664_v10  ;;  %v4293_v46 = vld [vmem:[#allocation3 + $0x20] sm:$0xff] }
 0x1e4   : > { %485 = vst.msk [vmem:[#allocation3 + $0x60] sm:$0xff] %vm472_vm2, %v3640_v59  ;;  %486 = vst.msk [vmem:[#allocation3 + $0x68] sm:$0xff] %vm472_vm2, %v3640_v59 }
 0x1e5   : > { %v2845_v12 = vpop.f32.mrb[14].mxu1  ;;  %v2813_v13 = vpop.f32.mrb[14].mxu0  ;;  %v967_v27 = vld [vmem:[#allocation2 + $0x58] sm:$0xff]  ;;  %487 = vst.msk [vmem:[#allocation3 + $0x70] sm:$0xff] %vm472_vm2, %v3640_v59  ;;  %488 = vst.msk [vmem:[#allocation3 + $0x78] sm:$0xff] %vm472_vm2, %v3640_v59  ;;  %v4303_v59 = vld [vmem:[#allocation3 + $0x28] sm:$0xff] }
 0x1e6   : > { %3053 = vmatpush3.bf16.xpose.msk.msra.mxu0 %vm4087_vm1, %v3048_v60  ;;  %v867_v14 = vpop.f32.mrb[15].mxu1  ;;  %698 = vst.msk [vmem:[#allocation2 + $0x78] sm:$0xff] %vm505_vm0, %v2813_v13  ;;  %v674_v15 = vpop.f32.mrb[15].mxu0  ;;  %v966_v26 = vld [vmem:[#allocation2 + $0x50] sm:$0xff] }
 0x1e7   : > { %3056 = vmatprep.subr.msk.bf16.mxu0 %vm4087_vm1, %v3054_v1  ;;  %v3072_v16 = vpack.c.bf16 %v2845_v12, %v867_v14  ;;  %697 = vst.msk [vmem:[#allocation2 + $0x70] sm:$0xff] %vm505_vm0, %v674_v15  ;;  %v3642_v15 = vmov 0.0  }
 0x1e8   : > { %489 = vst.msk [vmem:[#allocation4] sm:$0xff] %vm472_vm2, %v3642_v15  ;;  %490 = vst.msk [vmem:[#allocation4 + $0x8] sm:$0xff] %vm472_vm2, %v3642_v15 }
 0x1e9   : > { %v969_v29 = vld [vmem:[#allocation2 + $0x68] sm:$0xff]  ;;  %491 = vst.msk [vmem:[#allocation4 + $0x10] sm:$0xff] %vm472_vm2, %v3642_v15  ;;  %492 = vst.msk [vmem:[#allocation4 + $0x18] sm:$0xff] %vm472_vm2, %v3642_v15 }
 0x1ea   : > { %v968_v28 = vld [vmem:[#allocation2 + $0x60] sm:$0xff]  ;;  %493 = vst.msk [vmem:[#allocation4 + $0x20] sm:$0xff] %vm472_vm2, %v3642_v15  ;;  %494 = vst.msk [vmem:[#allocation4 + $0x28] sm:$0xff] %vm472_vm2, %v3642_v15 }
 0x1eb   : > { %495 = vst.msk [vmem:[#allocation4 + $0x30] sm:$0xff] %vm472_vm2, %v3642_v15  ;;  %496 = vst.msk [vmem:[#allocation4 + $0x38] sm:$0xff] %vm472_vm2, %v3642_v15 }
 0x1ec   : > { %497 = vst.msk [vmem:[#allocation4 + $0x40] sm:$0xff] %vm472_vm2, %v3642_v15  ;;  %498 = vst.msk [vmem:[#allocation4 + $0x48] sm:$0xff] %vm472_vm2, %v3642_v15 }
 0x1ed   : > { %v971_v31 = vld [vmem:[#allocation2 + $0x78] sm:$0xff]  ;;  %499 = vst.msk [vmem:[#allocation4 + $0x50] sm:$0xff] %vm472_vm2, %v3642_v15  ;;  %500 = vst.msk [vmem:[#allocation4 + $0x58] sm:$0xff] %vm472_vm2, %v3642_v15 }
 0x1ee   : > { %3059 = vmatpush3.bf16.xpose.msk.msra.mxu0 %vm4087_vm1, %v3054_v1  ;;  %v970_v30 = vld [vmem:[#allocation2 + $0x70] sm:$0xff]  ;;  %501 = vst.msk [vmem:[#allocation4 + $0x60] sm:$0xff] %vm472_vm2, %v3642_v15  ;;  %502 = vst.msk [vmem:[#allocation4 + $0x68] sm:$0xff] %vm472_vm2, %v3642_v15 }
 0x1ef   : > { %3062 = vmatprep.subr.msk.bf16.mxu0 %vm4087_vm1, %v3060_v6  ;;  %503 = vst.msk [vmem:[#allocation4 + $0x70] sm:$0xff] %vm472_vm2, %v3642_v15  ;;  %504 = vst.msk [vmem:[#allocation4 + $0x78] sm:$0xff] %vm472_vm2, %v3642_v15 }
 0x1f0   : > { %506 = vst.msk [vmem:[#allocation5] sm:$0xff] %vm505_vm0, %v3642_v15  ;;  %507 = vst.msk [vmem:[#allocation5 + $0x8] sm:$0xff] %vm505_vm0, %v3642_v15 }
 0x1f1   : > { %508 = vst.msk [vmem:[#allocation5 + $0x10] sm:$0xff] %vm505_vm0, %v3642_v15  ;;  %509 = vst.msk [vmem:[#allocation5 + $0x18] sm:$0xff] %vm505_vm0, %v3642_v15 }
 0x1f2   : > { %510 = vst.msk [vmem:[#allocation5 + $0x20] sm:$0xff] %vm505_vm0, %v3642_v15  ;;  %511 = vst.msk [vmem:[#allocation5 + $0x28] sm:$0xff] %vm505_vm0, %v3642_v15 }
 0x1f3   : > { %512 = vst.msk [vmem:[#allocation5 + $0x30] sm:$0xff] %vm505_vm0, %v3642_v15  ;;  %513 = vst.msk [vmem:[#allocation5 + $0x38] sm:$0xff] %vm505_vm0, %v3642_v15 }
 0x1f4   : > { %514 = vst.msk [vmem:[#allocation5 + $0x40] sm:$0xff] %vm505_vm0, %v3642_v15  ;;  %515 = vst.msk [vmem:[#allocation5 + $0x48] sm:$0xff] %vm505_vm0, %v3642_v15 }
 0x1f5   : > { %516 = vst.msk [vmem:[#allocation5 + $0x50] sm:$0xff] %vm505_vm0, %v3642_v15  ;;  %517 = vst.msk [vmem:[#allocation5 + $0x58] sm:$0xff] %vm505_vm0, %v3642_v15 }
 0x1f6   : > { %3065 = vmatpush3.bf16.xpose.msk.msra.mxu0 %vm4087_vm1, %v3060_v6  ;;  %518 = vst.msk [vmem:[#allocation5 + $0x60] sm:$0xff] %vm505_vm0, %v3642_v15  ;;  %519 = vst.msk [vmem:[#allocation5 + $0x68] sm:$0xff] %vm505_vm0, %v3642_v15 }
 0x1f7   : > { %3068 = vmatprep.subr.msk.bf16.mxu0 %vm4087_vm1, %v3066_v11  ;;  %520 = vst.msk [vmem:[#allocation5 + $0x70] sm:$0xff] %vm505_vm0, %v3642_v15  ;;  %521 = vst.msk [vmem:[#allocation5 + $0x78] sm:$0xff] %vm505_vm0, %v3642_v15  ;;  %v4322_v15 = vld [vmem:[#allocation3 + $0x38] sm:$0xff] }
 0x1fe   : > { %3071 = vmatpush3.bf16.xpose.msk.msra.mxu0 %vm4087_vm1, %v3066_v11 }
 0x1ff   : > { %3074 = vmatprep.subr.msk.bf16.mxu0 %vm4087_vm1, %v3072_v16 }
 0x206   : > { %3077 = vmatpush3.bf16.xpose.msk.msra.mxu0 %vm4087_vm1, %v3072_v16 }
 0x20d   : > { %2903 = vmatmul.mubr.msk.f32.vlgmr.msra.gmra.mrb[16].mxu0 %vm505_vm0, %v957_v18 }
 0x20e   : > { %2905 = vmatprep.mubr.msk.f32.mxu0 %vm505_vm0, %v958_v17 }
 0x211   : > { %2906 = vmatmul.mubr.msk.f32.gmra.mrb[18].mxu0 %vm505_vm0, %v959_v19  ;;  %v2848_v19 = vpop.f32.mrb[16].mxu1 }
 0x212   : > { %2908 = vmatprep.mubr.msk.f32.mxu0 %vm505_vm0, %v960_v20  ;;  %v877_v20 = vpop.f32.mrb[17].mxu1 }
 0x215   : > { %2909 = vmatmul.mubr.msk.f32.gmra.mrb[20].mxu0 %vm505_vm0, %v961_v21  ;;  %v3078_v21 = vpack.c.bf16 %v2848_v19, %v877_v20  ;;  %v4331_v20 = vld [vmem:[#allocation3 + $0x40] sm:$0xff] }
 0x216   : > { %2911 = vmatprep.mubr.msk.f32.mxu0 %vm505_vm0, %v962_v22  ;;  %v2851_v22 = vpop.f32.mrb[18].mxu1 }
 0x217   : > { %3079 = vmatprep.subr.bf16.mxu1 %v3078_v21 }
 0x218   : > { %3081 = vmatpush3.bf16.msra.mxu1 %v3078_v21 }
 0x219   : > { %2912 = vmatmul.mubr.msk.f32.gmra.mrb[22].mxu0 %vm505_vm0, %v963_v23  ;;  %v887_v23 = vpop.f32.mrb[19].mxu1 }
 0x21a   : > { %2914 = vmatprep.mubr.msk.f32.mxu0 %vm505_vm0, %v964_v24  ;;  %v3082_v24 = vpack.c.bf16 %v2851_v22, %v887_v23 }
 0x21c   : > { %3083 = vmatprep.subr.bf16.mxu1 %v3082_v24 }
 0x21d   : > { %2915 = vmatmul.mubr.msk.f32.gmra.mrb[24].mxu0 %vm505_vm0, %v965_v25  ;;  %v2854_v25 = vpop.f32.mrb[20].mxu1  ;;  %3085 = vmatpush3.bf16.msra.mxu1 %v3082_v24 }
 0x21e   : > { %2917 = vmatprep.mubr.msk.f32.mxu0 %vm505_vm0, %v966_v26  ;;  %v897_v26 = vpop.f32.mrb[21].mxu1 }
 0x221   : > { %2918 = vmatmul.mubr.msk.f32.gmra.mrb[26].mxu0 %vm505_vm0, %v967_v27  ;;  %v3086_v27 = vpack.c.bf16 %v2854_v25, %v897_v26 }
 0x222   : > { %2920 = vmatprep.mubr.msk.f32.mxu0 %vm505_vm0, %v968_v28 }
 0x223   : > { %3087 = vmatprep.subr.bf16.mxu1 %v3086_v27 }
 0x224   : > { %3089 = vmatpush3.bf16.msra.mxu1 %v3086_v27 }
 0x225   : > { %2921 = vmatmul.mubr.msk.f32.gmra.mrb[28].mxu0 %vm505_vm0, %v969_v29 }
 0x226   : > { %2923 = vmatprep.mubr.msk.f32.mxu0 %vm505_vm0, %v970_v30 }
 0x229   : > { %2924 = vmatmul.mubr.msk.f32.gmra.mrb[30].mxu0 %vm505_vm0, %v971_v31 }
 0x29f   : > { %v2857_v28 = vpop.f32.mrb[22].mxu1 }
 0x2a0   : > { %v907_v29 = vpop.f32.mrb[23].mxu1 }
 0x2a1   : > { %v3090_v30 = vpack.c.bf16 %v2857_v28, %v907_v29  ;;  %v4341_v28 = vld [vmem:[#allocation3 + $0x48] sm:$0xff] }
 0x2a3   : > { %v2860_v31 = vpop.f32.mrb[24].mxu1  ;;  %3091 = vmatprep.subr.bf16.mxu1 %v3090_v30 }
 0x2a4   : > { %3093 = vmatpush3.bf16.msra.mxu1 %v3090_v30  ;;  %v917_v39 = vpop.f32.mrb[25].mxu1 }
 0x2a5   : > { %v3094_v42 = vpack.c.bf16 %v2860_v31, %v917_v39  ;;  %v4350_v31 = vld [vmem:[#allocation3 + $0x50] sm:$0xff] }
 0x2a7   : > { %v2863_v47 = vpop.f32.mrb[26].mxu1  ;;  %3095 = vmatprep.subr.bf16.mxu1 %v3094_v42 }
 0x2a8   : > { %3097 = vmatpush3.bf16.msra.mxu1 %v3094_v42  ;;  %v4360_v42 = vld [vmem:[#allocation3 + $0x58] sm:$0xff] }
 0x2e0   : > { %v2904_v48 = vpop.f32.mrb[16].mxu0 }
 0x2e1   : > { %v1135_v49 = vpop.f32.mrb[17].mxu0  ;;  %v4176_v54 = vmul.f32 0.17677669, %v2904_v48 }
 0x2e2   : > { %v4171_v50 = vmul.f32 0.17677669, %v1135_v49 }
 0x2e4   : > { %1246 = vmax.xlane.f32.xlu0 %v4171_v50  ;;  %v2907_v51 = vpop.f32.mrb[18].mxu0 }
 0x2e5   : > { %v4174_v52 = vmul.f32 0.17677669, %v2907_v51  ;;  %v1145_v53 = vpop.f32.mrb[19].mxu0  ;;  %v927_v51 = vpop.f32.mrb[27].mxu1 }
 0x2e6   : > { %v4179_v55 = vmul.f32 0.17677669, %v1145_v53 }
 0x2e7   : > { %1252 = vmax.xlane.f32.xlu1 %v4174_v52 }
 0x2e8   : > { %1248 = vmax.xlane.f32.xlu0 %v4176_v54  ;;  %v2910_v56 = vpop.f32.mrb[20].mxu0 }
 0x2e9   : > { %v1155_v57 = vpop.f32.mrb[21].mxu0  ;;  %v4201_v60 = vmul.f32 0.17677669, %v2910_v56 }
 0x2ea   : > { %v4182_v58 = vmul.f32 0.17677669, %v1155_v57  ;;  %v3098_v57 = vpack.c.bf16 %v2863_v47, %v927_v51  ;;  %v4370_v51 = vld [vmem:[#allocation3 + $0x60] sm:$0xff] }
 0x2eb   : > { %1250 = vmax.xlane.f32.xlu1 %v4179_v55 }
 0x2ec   : > { %v2913_v61 = vpop.f32.mrb[22].mxu0  ;;  %1254 = vmax.xlane.f32.xlu0 %v4182_v58  ;;  %3099 = vmatprep.subr.bf16.mxu1 %v3098_v57 }
 0x2ed   : > { %v1165_v62 = vpop.f32.mrb[23].mxu0  ;;  %v4207_v0 = vmul.f32 0.17677669, %v2913_v61  ;;  %3101 = vmatpush3.bf16.msra.mxu1 %v3098_v57 }
 0x2ee   : > { %v4204_v63 = vmul.f32 0.17677669, %v1165_v62 }
 0x2ef   : > { %1256 = vmax.xlane.f32.xlu1 %v4201_v60 }
 0x2f0   : > { %v2916_v1 = vpop.f32.mrb[24].mxu0  ;;  %1258 = vmax.xlane.f32.xlu0 %v4204_v63 }
 0x2f1   : > { %v1175_v2 = vpop.f32.mrb[25].mxu0  ;;  %v4213_v4 = vmul.f32 0.17677669, %v2916_v1  ;;  %v4312_v1 = vld [vmem:[#allocation3 + $0x30] sm:$0xff] }
 0x2f2   : > { %v4210_v3 = vmul.f32 0.17677669, %v1175_v2  ;;  %v2866_v2 = vpop.f32.mrb[28].mxu1 }
 0x2f3   : > { %1260 = vmax.xlane.f32.xlu1 %v4207_v0 }
 0x2f4   : > { %v2919_v6 = vpop.f32.mrb[26].mxu0  ;;  %1262 = vmax.xlane.f32.xlu0 %v4210_v3 }
 0x2f5   : > { %v1185_v7 = vpop.f32.mrb[27].mxu0  ;;  %v4219_v9 = vmul.f32 0.17677669, %v2919_v6 }
 0x2f6   : > { %v4216_v8 = vmul.f32 0.17677669, %v1185_v7  ;;  %v937_v7 = vpop.f32.mrb[29].mxu1 }
 0x2f7   : > { %1264 = vmax.xlane.f32.xlu1 %v4213_v4  ;;  %v2869_v21 = vpop.f32.mrb[30].mxu1 }
 0x2f8   : > { %v2922_v10 = vpop.f32.mrb[28].mxu0  ;;  %1266 = vmax.xlane.f32.xlu0 %v4216_v8  ;;  %v947_v24 = vpop.f32.mrb[31].mxu1 }
 0x2f9   : > { %v1195_v11 = vpop.f32.mrb[29].mxu0  ;;  %v4225_v13 = vmul.f32 0.17677669, %v2922_v10  ;;  %v3106_v27 = vpack.c.bf16 %v2869_v21, %v947_v24  ;;  %v4390_v21 = vld [vmem:[#allocation3 + $0x70] sm:$0xff] }
 0x2fa   : > { %v4222_v12 = vmul.f32 0.17677669, %v1195_v11 }
 0x2fb   : > { %1268 = vmax.xlane.f32.xlu1 %v4219_v9 }
 0x2fc   : > { %v2925_v14 = vpop.f32.mrb[30].mxu0  ;;  %1270 = vmax.xlane.f32.xlu0 %v4222_v12 }
 0x2fd   : > { %v1205_v16 = vpop.f32.mrb[31].mxu0  ;;  %v4263_v18 = vmul.f32 0.17677669, %v2925_v14  ;;  %v3102_v14 = vpack.c.bf16 %v2866_v2, %v937_v7  ;;  %v4380_v7 = vld [vmem:[#allocation3 + $0x68] sm:$0xff] }
 0x2fe   : > { %v4260_v17 = vmul.f32 0.17677669, %v1205_v16 }
 0x2ff   : > { %1272 = vmax.xlane.f32.xlu1 %v4225_v13  ;;  %3103 = vmatprep.subr.bf16.mxu1 %v3102_v14 }
 0x300   : > { %1274 = vmax.xlane.f32.xlu0 %v4260_v17  ;;  %3105 = vmatpush3.bf16.msra.mxu1 %v3102_v14 }
 0x301   : > { %3107 = vmatprep.subr.bf16.mxu1 %v3106_v27 }
 0x303   : > { %1276 = vmax.xlane.f32.xlu1 %v4263_v18 }
 0x304   : > { %3109 = vmatpush3.bf16.msra.mxu1 %v3106_v27 }
 0x371   : > { %v1247_v33 = vpop.xlane.xlu0 %1246 }
 0x372   : > { %v4270_v34 = vmax.f32 %v4267_v32, %v1247_v33 }
 0x374   : > { %v1294_v37 = vsub.f32 %v4267_v32, %v4270_v34  ;;  %1856 = vst.msk [vmem:[#allocation3] sm:$0xff] %vm472_vm2, %v4270_v34  ;;  %v1253_v38 = vpop.xlane.xlu1 %1252  ;;  %1344 = vperm.xlu0 %3252, %v4270_v34  }
 0x375   : > { %v4282_v40 = vmax.f32 %v4272_v35, %v1253_v38  ;;  %v1249_v41 = vpop.xlane.xlu0 %1248 }
 0x376   : > { %v4285_v43 = vmax.f32 %v4274_v36, %v1249_v41 }
 0x377   : > { %1859 = vst.msk [vmem:[#allocation3 + $0x18] sm:$0xff] %vm472_vm2, %v4282_v40 }
 0x378   : > { %1857 = vst.msk [vmem:[#allocation3 + $0x8] sm:$0xff] %vm472_vm2, %v4285_v43  ;;  %v1251_v49 = vpop.xlane.xlu1 %1250  ;;  %1349 = vperm.xlu1 %3253, %v4285_v43  }
 0x379   : > { %v4301_v53 = vmax.f32 %v4287_v44, %v1251_v49  ;;  %v1255_v56 = vpop.xlane.xlu0 %1254 }
 0x37a   : > { %v4306_v61 = vmax.f32 %v4293_v46, %v1255_v56 }
 0x37b   : > { %1858 = vst.msk [vmem:[#allocation3 + $0x10] sm:$0xff] %vm472_vm2, %v4301_v53 }
 0x37c   : > { %v1257_v5 = vpop.xlane.xlu1 %1256  ;;  %1359 = vperm.xlu1 %3253, %v4282_v40   ;;  %1860 = vst.msk [vmem:[#allocation3 + $0x20] sm:$0xff] %vm472_vm2, %v4306_v61 }
 0x37d   : > { %v4320_v10 = vmax.f32 %v4303_v59, %v1257_v5  ;;  %v1259_v11 = vpop.xlane.xlu0 %1258 }
 0x37e   : > { %v4325_v16 = vmax.f32 %v4312_v1, %v1259_v11 }
 0x37f   : > { %1861 = vst.msk [vmem:[#allocation3 + $0x28] sm:$0xff] %vm472_vm2, %v4320_v10 }
 0x380   : > { %v1261_v22 = vpop.xlane.xlu1 %1260  ;;  %1354 = vperm.xlu1 %3253, %v4301_v53   ;;  %1862 = vst.msk [vmem:[#allocation3 + $0x30] sm:$0xff] %vm472_vm2, %v4325_v16 }
 0x381   : > { %v4339_v25 = vmax.f32 %v4322_v15, %v1261_v22  ;;  %v1263_v26 = vpop.xlane.xlu0 %1262 }
 0x382   : > { %v4344_v29 = vmax.f32 %v4331_v20, %v1263_v26 }
 0x383   : > { %1863 = vst.msk [vmem:[#allocation3 + $0x38] sm:$0xff] %vm472_vm2, %v4339_v25 }
 0x384   : > { %v1265_v33 = vpop.xlane.xlu1 %1264  ;;  %1369 = vperm.xlu1 %3253, %v4320_v10   ;;  %v1302_v38 = vsub.f32 %v4331_v20, %v4344_v29  ;;  %1864 = vst.msk [vmem:[#allocation3 + $0x40] sm:$0xff] %vm472_vm2, %v4344_v29  ;;  %v4778_v20 = vsub.f32 %v4272_v35, %v4282_v40 }
 0x385   : > { %v4358_v39 = vmax.f32 %v4341_v28, %v1265_v33  ;;  %v1267_v41 = vpop.xlane.xlu0 %1266  ;;  %v4400_v33 = vld [vmem:[#allocation3 + $0x78] sm:$0xff] }
 0x386   : > { %v4363_v47 = vmax.f32 %v4350_v31, %v1267_v41 }
 0x387   : > { %1865 = vst.msk [vmem:[#allocation3 + $0x48] sm:$0xff] %vm472_vm2, %v4358_v39  ;;  %1389 = vperm.xlu0 %3252, %v4358_v39  }
 0x388   : > { %v1269_v56 = vpop.xlane.xlu1 %1268  ;;  %1364 = vperm.xlu1 %3253, %v4306_v61   ;;  %1866 = vst.msk [vmem:[#allocation3 + $0x50] sm:$0xff] %vm472_vm2, %v4363_v47  ;;  %v4777_v34 = vsub.f32 %v4350_v31, %v4363_v47 }
 0x389   : > { %v4378_v2 = vmax.f32 %v4360_v42, %v1269_v56  ;;  %v1271_v5 = vpop.xlane.xlu0 %1270 }
 0x38a   : > { %v4383_v11 = vmax.f32 %v4370_v51, %v1271_v5 }
 0x38b   : > { %1867 = vst.msk [vmem:[#allocation3 + $0x58] sm:$0xff] %vm472_vm2, %v4378_v2  ;;  %1399 = vperm.xlu0 %3252, %v4378_v2  }
 0x38c   : > { %v1273_v22 = vpop.xlane.xlu1 %1272  ;;  %1379 = vperm.xlu1 %3253, %v4339_v25   ;;  %1868 = vst.msk [vmem:[#allocation3 + $0x60] sm:$0xff] %vm472_vm2, %v4383_v11  ;;  %v4781_v35 = vsub.f32 %v4370_v51, %v4383_v11  ;;  %v4784_v51 = vsub.f32 %v4312_v1, %v4325_v16 }
 0x38d   : > { %v4398_v26 = vmax.f32 %v4380_v7, %v1273_v22  ;;  %v1275_v27 = vpop.xlane.xlu0 %1274 }
 0x38e   : > { %v4403_v41 = vmax.f32 %v4390_v21, %v1275_v27  ;;  %v1334_v40 = vmul.f32 1.442695, %v4781_v35 }
 0x38f   : > { %1869 = vst.msk [vmem:[#allocation3 + $0x68] sm:$0xff] %vm472_vm2, %v4398_v26  ;;  %1409 = vperm.xlu0 %3252, %v4398_v26  }
 0x390   : > { %v1277_v5 = vpop.xlane.xlu1 %1276  ;;  %1374 = vperm.xlu1 %3253, %v4325_v16   ;;  %1870 = vst.msk [vmem:[#allocation3 + $0x70] sm:$0xff] %vm472_vm2, %v4403_v41 }
 0x391   : > { %v4416_v27 = vmax.f32 %v4400_v33, %v1277_v5 }
 0x393   : > { %1871 = vst.msk [vmem:[#allocation3 + $0x78] sm:$0xff] %vm472_vm2, %v4416_v27  ;;  %1419 = vperm.xlu0 %3252, %v4416_v27   ;;  %v4787_v1 = vsub.f32 %v4400_v33, %v4416_v27 }
 0x394   : > { %1384 = vperm.xlu1 %3253, %v4344_v29  }
 0x395   : > { %v1340_v16 = vmul.f32 1.442695, %v4787_v1 }
 0x398   : > { %1394 = vperm.xlu1 %3253, %v4363_v47  }
 0x39c   : > { %1404 = vperm.xlu1 %3253, %v4383_v11   ;;  %v1322_v11 = vmul.f32 1.442695, %v4784_v51  ;;  %v1474_v51 = vld [vmem:[#allocation4 + $0x20] sm:$0xff] }
 0x3a0   : > { %1414 = vperm.xlu1 %3253, %v4403_v41  }
 0x3f3   : > { %v1345_v22 = vpop.permute.xlu0 %1344 }
 0x3f4   : > { %v1422_v5 = vsub.f32 %v4171_v50, %v1345_v22 }
 0x3f6   : > { %v1438_v23 = vmul.f32 1.442695, %v1422_v5 }
 0x3f7   : > { %v1350_v56 = vpop.permute.xlu1 %1349 }
 0x3f8   : > { %3254 = vpow2.f32 %v1438_v23  ;;  %v1423_v30 = vsub.f32 %v4176_v54, %v1350_v56 }
 0x3fa   : > { %v1440_v19 = vmul.f32 1.442695, %v1423_v30 }
 0x3fb   : > { %v1360_v24 = vpop.permute.xlu1 %1359 }
 0x3fc   : > { %3256 = vpow2.f32 %v1440_v19  ;;  %v1425_v6 = vsub.f32 %v4174_v52, %v1360_v24 }
 0x3fe   : > { %v1444_v14 = vmul.f32 1.442695, %v1425_v6 }
 0x3ff   : > { %v1355_v45 = vpop.permute.xlu1 %1354 }
 0x400   : > { %3258 = vpow2.f32 %v1444_v14  ;;  %v1424_v57 = vsub.f32 %v4179_v55, %v1355_v45 }
 0x402   : > { %v3255_v62 = vpop.eup %3254  ;;  %v1442_v49 = vmul.f32 1.442695, %v1424_v57 }
 0x403   : > { %v1370_v48 = vpop.permute.xlu1 %1369  ;;  %1502 = vadd.xlane.f32.xlu1 %v3255_v62  ;;  %2958 = vmatprep.mubr.f32.mxu1 %v3255_v62 }
 0x404   : > { %3260 = vpow2.f32 %v1442_v49  ;;  %v1427_v50 = vsub.f32 %v4201_v60, %v1370_v48 }
 0x406   : > { %v3257_v23 = vpop.eup %3256  ;;  %v1390_v54 = vpop.permute.xlu0 %1389  ;;  %v1448_v6 = vmul.f32 1.442695, %v1427_v50 }
 0x407   : > { %v1431_v30 = vsub.f32 %v4213_v4, %v1390_v54  ;;  %v1365_v19 = vpop.permute.xlu1 %1364  ;;  %1504 = vadd.xlane.f32.xlu0 %v3257_v23  ;;  %2959 = vmatmul.mubr.f32.vlgmr.msra.gmra.mrb[32].mxu1 %v3257_v23 }
 0x408   : > { %v1426_v52 = vsub.f32 %v4182_v58, %v1365_v19 }
 0x409   : > { %v1456_v14 = vmul.f32 1.442695, %v1431_v30 }
 0x40a   : > { %v3259_v55 = vpop.eup %3258  ;;  %v1446_v45 = vmul.f32 1.442695, %v1426_v52  ;;  %v1400_v57 = vpop.permute.xlu0 %1399 }
 0x40b   : > { %3262 = vpow2.f32 %v1456_v14  ;;  %v1433_v62 = vsub.f32 %v4219_v9, %v1400_v57  ;;  %v1380_v49 = vpop.permute.xlu1 %1379  ;;  %1508 = vadd.xlane.f32.xlu0 %v3259_v55 }
 0x40c   : > { %3264 = vpow2.f32 %v1446_v45  ;;  %v1429_v4 = vsub.f32 %v4207_v0, %v1380_v49 }
 0x40d   : > { %3266 = vpow2.f32 %v1448_v6  ;;  %v1460_v60 = vmul.f32 1.442695, %v1433_v62 }
 0x40e   : > { %v3261_v48 = vpop.eup %3260  ;;  %v1452_v56 = vmul.f32 1.442695, %v1429_v4  ;;  %v1410_v50 = vpop.permute.xlu0 %1409 }
 0x40f   : > { %3268 = vpow2.f32 %v1460_v60  ;;  %v1375_v24 = vpop.permute.xlu1 %1374  ;;  %1506 = vadd.xlane.f32.xlu0 %v3261_v48  ;;  %2961 = vmatprep.mubr.f32.mxu1 %v3261_v48  ;;  %v1435_v6 = vsub.f32 %v4225_v13, %v1410_v50  ;;  %v1326_v50 = vmul.f32 1.442695, %v1302_v38 }
 0x410   : > { %v1428_v58 = vsub.f32 %v4204_v63, %v1375_v24  ;;  %2962 = vmatmul.mubr.f32.gmra.mrb[34].mxu1 %v3259_v55 }
 0x411   : > { %v1464_v57 = vmul.f32 1.442695, %v1435_v6 }
 0x412   : > { %v1450_v22 = vmul.f32 1.442695, %v1428_v58  ;;  %v1420_v14 = vpop.permute.xlu0 %1419 }
 0x413   : > { %v1385_v5 = vpop.permute.xlu1 %1384  ;;  %v1437_v62 = vsub.f32 %v4263_v18, %v1420_v14 }
 0x414   : > { %3270 = vpow2.f32 %v1450_v22  ;;  %v1430_v9 = vsub.f32 %v4210_v3, %v1385_v5  ;;  %v1310_v5 = vmul.f32 1.442695, %v1294_v37  ;;  %v1330_v37 = vmul.f32 1.442695, %v4777_v34 }
 0x415   : > { %v3263_v23 = vpop.eup %3262  ;;  %3272 = vpow2.f32 %v1452_v56  ;;  %v1468_v13 = vmul.f32 1.442695, %v1437_v62 }
 0x416   : > { %v3265_v54 = vpop.eup %3264  ;;  %v1454_v30 = vmul.f32 1.442695, %v1430_v9  ;;  %1520 = vadd.xlane.f32.xlu1 %v3263_v23  ;;  %v4774_v9 = vsub.f32 %v4274_v36, %v4285_v43  ;;  %v1316_v36 = vmul.f32 1.442695, %v4778_v20  ;;  %v4779_v43 = vsub.f32 %v4360_v42, %v4378_v2 }
 0x417   : > { %v3267_v0 = vpop.eup %3266  ;;  %v1395_v19 = vpop.permute.xlu1 %1394  ;;  %2964 = vmatprep.mubr.f32.mxu1 %v3265_v54  ;;  %v4782_v42 = vsub.f32 %v4303_v59, %v4320_v10  ;;  %v4785_v59 = vsub.f32 %v4390_v21, %v4403_v41 }
 0x418   : > { %3274 = vpow2.f32 %v1454_v30  ;;  %v1432_v52 = vsub.f32 %v4216_v8, %v1395_v19  ;;  %2965 = vmatmul.mubr.f32.gmra.mrb[36].mxu1 %v3267_v0 }
 0x419   : > { %v3269_v63 = vpop.eup %3268  ;;  %v1320_v47 = vmul.f32 1.442695, %v4782_v42  ;;  %v1338_v10 = vmul.f32 1.442695, %v4785_v59  ;;  %v2086_v59 = vld [vmem:[%s4049_s24 + $0x18] sm:$0xff] }
 0x41a   : > { %v1458_v55 = vmul.f32 1.442695, %v1432_v52  ;;  %1524 = vadd.xlane.f32.xlu1 %v3269_v63 }
 0x41b   : > { %v1405_v45 = vpop.permute.xlu1 %1404 }
 0x41c   : > { %3276 = vpow2.f32 %v1458_v55  ;;  %v1434_v3 = vsub.f32 %v4222_v12, %v1405_v45  ;;  %v2083_v55 = vld [vmem:[%s4049_s24] sm:$0xff]  ;;  %v2084_v45 = vld [vmem:[%s4049_s24 + $0x8] sm:$0xff] }
 0x41e   : > { %v3271_v49 = vpop.eup %3270  ;;  %v1462_v60 = vmul.f32 1.442695, %v1434_v3  ;;  %v3110_v3 = vpack.c.bf16 %v2084_v45, %v2083_v55 }
 0x41f   : > { %v3273_v4 = vpop.eup %3272  ;;  %v1415_v48 = vpop.permute.xlu1 %1414  ;;  %2967 = vmatprep.mubr.f32.mxu1 %v3271_v49 }
 0x420   : > { %3278 = vpow2.f32 %v1462_v60  ;;  %v1436_v8 = vsub.f32 %v4260_v17, %v1415_v48  ;;  %2968 = vmatmul.mubr.f32.gmra.mrb[38].mxu1 %v3273_v4  ;;  %3111 = vmatprep.subr.bf16.mxu0 %v3110_v3  ;;  %v1471_v60 = vld [vmem:[#allocation4 + $0x8] sm:$0xff] }
 0x421   : > { %3280 = vpow2.f32 %v1464_v57  ;;  %3118 = vmatprep.subr.bf16.mxu1 %v3110_v3  ;;  %3113 = vmatpush3.bf16.msra.mxu0 %v3110_v3  ;;  %v1470_v57 = vld [vmem:[#allocation4] sm:$0xff] }
 0x422   : > { %v3275_v24 = vpop.eup %3274  ;;  %v1466_v58 = vmul.f32 1.442695, %v1436_v8  ;;  %3120 = vmatpush3.bf16.msra.mxu1 %v3110_v3  ;;  %v1475_v3 = vld [vmem:[#allocation4 + $0x28] sm:$0xff] }
 0x423   : > { %1518 = vadd.xlane.f32.xlu0 %v3275_v24  ;;  %2970 = vmatprep.mubr.f32.mxu1 %v3275_v24 }
 0x424   : > { %3282 = vpow2.f32 %v1466_v58  ;;  %2971 = vmatmul.mubr.f32.gmra.mrb[40].mxu1 %v3263_v23  ;;  %v1312_v23 = vmul.f32 1.442695, %v4774_v9 }
 0x425   : > { %3284 = vpow2.f32 %v1468_v13  ;;  %v1473_v13 = vld [vmem:[#allocation4 + $0x18] sm:$0xff] }
 0x426   : > { %v3277_v12 = vpop.eup %3276  ;;  %3286 = vpow2.f32 %v1310_v5 }
 0x427   : > { %1510 = vadd.xlane.f32.xlu0 %v3265_v54  ;;  %2973 = vmatprep.mubr.f32.mxu1 %v3277_v12  ;;  %v4775_v54 = vsub.f32 %v4341_v28, %v4358_v39  ;;  %3288 = vpow2.f32 %v1326_v50  ;;  %v1332_v28 = vmul.f32 1.442695, %v4779_v43 }
 0x428   : > { %1522 = vadd.xlane.f32.xlu1 %v3277_v12  ;;  %2974 = vmatmul.mubr.f32.gmra.mrb[42].mxu1 %v3269_v63  ;;  %3290 = vpow2.f32 %v1312_v23  ;;  %v1479_v23 = vld [vmem:[#allocation4 + $0x48] sm:$0xff] }
 0x429   : > { %v1328_v30 = vmul.f32 1.442695, %v4775_v54 }
 0x42a   : > { %v3279_v18 = vpop.eup %3278 }
 0x42b   : > { %v3281_v56 = vpop.eup %3280  ;;  %1512 = vadd.xlane.f32.xlu0 %v3267_v0  ;;  %2976 = vmatprep.mubr.f32.mxu1 %v3279_v18  ;;  %v4776_v0 = vsub.f32 %v4287_v44, %v4301_v53  ;;  %3292 = vpow2.f32 %v1328_v30  ;;  %v4780_v44 = vsub.f32 %v4293_v46, %v4306_v61  ;;  %v4783_v46 = vsub.f32 %v4380_v7, %v4398_v26 }
 0x42c   : > { %1528 = vadd.xlane.f32.xlu1 %v3281_v56  ;;  %2977 = vmatmul.mubr.f32.gmra.mrb[44].mxu1 %v3281_v56  ;;  %v4786_v26 = vsub.f32 %v4322_v15, %v4339_v25 }
 0x42d   : > { %v1314_v32 = vmul.f32 1.442695, %v4776_v0  ;;  %v1318_v53 = vmul.f32 1.442695, %v4780_v44  ;;  %v1336_v61 = vmul.f32 1.442695, %v4783_v46 }
 0x42e   : > { %v3283_v17 = vpop.eup %3282  ;;  %v1324_v63 = vmul.f32 1.442695, %v4786_v26 }
 0x42f   : > { %v3285_v22 = vpop.eup %3284  ;;  %1514 = vadd.xlane.f32.xlu0 %v3271_v49  ;;  %2979 = vmatprep.mubr.f32.mxu1 %v3283_v17  ;;  %3294 = vpow2.f32 %v1314_v32  ;;  %v1481_v32 = vld [vmem:[#allocation4 + $0x58] sm:$0xff] }
 0x430   : > { %1526 = vadd.xlane.f32.xlu1 %v3279_v18  ;;  %2980 = vmatmul.mubr.f32.gmra.mrb[46].mxu1 %v3285_v22  ;;  %3296 = vpow2.f32 %v1330_v37  ;;  %v3287_v29 = vpop.eup %3286  ;;  %v1472_v18 = vld [vmem:[#allocation4 + $0x10] sm:$0xff] }
 0x431   : > { %v4467_v38 = vpop.eup %3288  ;;  %3298 = vpow2.f32 %v1316_v36  ;;  %v1486_v62 = vmul.f32 %v3287_v29, %v1470_v57 }
 0x432   : > { %3300 = vpow2.f32 %v1332_v28  ;;  %v3291_v31 = vpop.eup %3290 }
 0x433   : > { %1516 = vadd.xlane.f32.xlu0 %v3273_v4  ;;  %3302 = vpow2.f32 %v1318_v53  ;;  %v1487_v48 = vmul.f32 %v3291_v31, %v1471_v60 }
 0x434   : > { %1530 = vadd.xlane.f32.xlu1 %v3283_v17  ;;  %3304 = vpow2.f32 %v1334_v40  ;;  %v1478_v40 = vld [vmem:[#allocation4 + $0x40] sm:$0xff] }
 0x435   : > { %v4476_v39 = vpop.eup %3292  ;;  %3306 = vpow2.f32 %v1320_v47 }
 0x436   : > { %3308 = vpow2.f32 %v1336_v61  ;;  %v1495_v54 = vmul.f32 %v4476_v39, %v1479_v23  ;;  %v1494_v61 = vmul.f32 %v4467_v38, %v1478_v40 }
 0x437   : > { %3310 = vpow2.f32 %v1322_v11  ;;  %v2085_v11 = vld [vmem:[%s4049_s24 + $0x10] sm:$0xff] }
 0x438   : > { %1532 = vadd.xlane.f32.xlu1 %v3285_v22  ;;  %3312 = vpow2.f32 %v1338_v10  ;;  %v3114_v26 = vpack.c.bf16 %v2086_v59, %v2085_v11 }
 0x439   : > { %v3295_v2 = vpop.eup %3294  ;;  %3314 = vpow2.f32 %v1324_v63 }
 0x43a   : > { %v4485_v19 = vpop.eup %3296  ;;  %3316 = vpow2.f32 %v1340_v16  ;;  %v1488_v22 = vmul.f32 %v3295_v2, %v1472_v18  ;;  %3115 = vmatprep.subr.bf16.mxu0 %v3114_v26  ;;  %3119 = vmatprep.subr.bf16.mxu1 %v3114_v26 }
 0x43b   : > { %v3299_v52 = vpop.eup %3298  ;;  %3117 = vmatpush3.bf16.msra.mxu0 %v3114_v26  ;;  %3121 = vmatpush3.bf16.msra.mxu1 %v3114_v26 }
 0x43c   : > { %v4494_v7 = vpop.eup %3300  ;;  %v1489_v58 = vmul.f32 %v3299_v52, %v1473_v13 }
 0x43d   : > { %v4503_v6 = vpop.eup %3302  ;;  %v1497_v37 = vmul.f32 %v4494_v7, %v1481_v32 }
 0x43e   : > { %v4505_v21 = vpop.eup %3304  ;;  %v1490_v55 = vmul.f32 %v4503_v6, %v1474_v51 }
 0x43f   : > { %v4509_v15 = vpop.eup %3306 }
 0x440   : > { %v4511_v25 = vpop.eup %3308 }
 0x441   : > { %v4515_v33 = vpop.eup %3310 }
 0x442   : > { %v4517_v41 = vpop.eup %3312 }
 0x443   : > { %v4521_v27 = vpop.eup %3314 }
 0x444   : > { %v4523_v14 = vpop.eup %3316 }
 0x449   : > { %1625 = vperm.xlu1 %3253, %v4467_v38   ;;  %1585 = vperm.xlu0 %3252, %v3287_v29  }
 0x44d   : > { %1590 = vperm.xlu1 %3253, %v3291_v31   ;;  %1630 = vperm.xlu0 %3252, %v4476_v39  }
 0x451   : > { %1595 = vperm.xlu1 %3253, %v3295_v2   ;;  %1635 = vperm.xlu0 %3252, %v4485_v19  }
 0x455   : > { %1600 = vperm.xlu1 %3253, %v3299_v52   ;;  %1640 = vperm.xlu0 %3252, %v4494_v7   ;;  %v1480_v7 = vld [vmem:[#allocation4 + $0x50] sm:$0xff] }
 0x456   : > { %v1496_v38 = vmul.f32 %v4485_v19, %v1480_v7 }
 0x459   : > { %1605 = vperm.xlu1 %3253, %v4503_v6   ;;  %1645 = vperm.xlu0 %3252, %v4505_v21   ;;  %v1491_v6 = vmul.f32 %v4509_v15, %v1475_v3 }
 0x45d   : > { %1610 = vperm.xlu1 %3253, %v4509_v15   ;;  %1650 = vperm.xlu0 %3252, %v4511_v25  }
 0x461   : > { %1615 = vperm.xlu1 %3253, %v4515_v33   ;;  %1655 = vperm.xlu0 %3252, %v4517_v41  }
 0x465   : > { %1620 = vperm.xlu1 %3253, %v4521_v27   ;;  %1660 = vperm.xlu0 %3252, %v4523_v14  }
 0x490   : > { %v1503_v49 = vpop.xlane.xlu1 %1502 }
 0x491   : > { %v1534_v4 = vadd.f32 %v1503_v49, %v1486_v62  ;;  %v1483_v49 = vld [vmem:[#allocation4 + $0x68] sm:$0xff] }
 0x492   : > { %v1499_v19 = vmul.f32 %v4511_v25, %v1483_v49 }
 0x493   : > { %1551 = vst.msk [vmem:[#allocation4] sm:$0xff] %vm472_vm2, %v1534_v4 }
 0x494   : > { %v1505_v8 = vpop.xlane.xlu0 %1504 }
 0x495   : > { %v1535_v24 = vadd.f32 %v1505_v8, %v1487_v48 }
 0x497   : > { %1552 = vst.msk [vmem:[#allocation4 + $0x8] sm:$0xff] %vm472_vm2, %v1535_v24 }
 0x498   : > { %v1509_v12 = vpop.xlane.xlu0 %1508 }
 0x499   : > { %v1537_v56 = vadd.f32 %v1509_v12, %v1489_v58  ;;  %v1476_v58 = vld [vmem:[#allocation4 + $0x30] sm:$0xff] }
 0x49a   : > { %v1875_v17 = vld [vmem:[#allocation4] sm:$0xff]  ;;  %v1492_v15 = vmul.f32 %v4515_v33, %v1476_v58 }
 0x49b   : > { %1554 = vst.msk [vmem:[#allocation4 + $0x18] sm:$0xff] %vm472_vm2, %v1537_v56  ;;  %3318 = vrcp.f32 %v1875_v17  ;;  %v1482_v56 = vld [vmem:[#allocation4 + $0x60] sm:$0xff] }
 0x49c   : > { %v1507_v5 = vpop.xlane.xlu0 %1506  ;;  %v1498_v25 = vmul.f32 %v4505_v21, %v1482_v56 }
 0x49d   : > { %v1536_v50 = vadd.f32 %v1507_v5, %v1488_v22 }
 0x49e   : > { %v1876_v9 = vld [vmem:[#allocation4 + $0x8] sm:$0xff] }
 0x49f   : > { %1553 = vst.msk [vmem:[#allocation4 + $0x10] sm:$0xff] %vm472_vm2, %v1536_v50  ;;  %3320 = vrcp.f32 %v1876_v9 }
 0x4a2   : > { %v1878_v30 = vld [vmem:[#allocation4 + $0x18] sm:$0xff] }
 0x4a3   : > { %v1521_v0 = vpop.xlane.xlu1 %1520  ;;  %3322 = vrcp.f32 %v1878_v30 }
 0x4a4   : > { %v1543_v34 = vadd.f32 %v1521_v0, %v1495_v54  ;;  %v1477_v54 = vld [vmem:[#allocation4 + $0x38] sm:$0xff] }
 0x4a5   : > { %v3319_v36 = vpop.eup %3318  ;;  %v1493_v33 = vmul.f32 %v4521_v27, %v1477_v54 }
 0x4a6   : > { %1560 = vst.msk [vmem:[#allocation4 + $0x48] sm:$0xff] %vm472_vm2, %v1543_v34  ;;  %v1877_v20 = vld [vmem:[#allocation4 + $0x10] sm:$0xff]  ;;  %v1907_v53 = vmul.f32 %v3319_v36, %v1875_v17 }
 0x4a7   : > { %v1525_v43 = vpop.xlane.xlu1 %1524  ;;  %3324 = vrcp.f32 %v1877_v20  ;;  %v1484_v34 = vld [vmem:[#allocation4 + $0x70] sm:$0xff] }
 0x4a8   : > { %v1545_v28 = vadd.f32 %v1525_v43, %v1497_v37  ;;  %v1923_v47 = vsub.f32 2.0, %v1907_v53  ;;  %v1500_v21 = vmul.f32 %v4517_v41, %v1484_v34 }
 0x4a9   : > { %v3321_v29 = vpop.eup %3320 }
 0x4aa   : > { %1562 = vst.msk [vmem:[#allocation4 + $0x58] sm:$0xff] %vm472_vm2, %v1545_v28  ;;  %v1908_v44 = vmul.f32 %v3321_v29, %v1876_v9  ;;  %v1939_v63 = vmul.f32 %v3319_v36, %v1923_v47 }
 0x4ac   : > { %v1924_v35 = vsub.f32 2.0, %v1908_v44  ;;  %v1485_v44 = vld [vmem:[#allocation4 + $0x78] sm:$0xff] }
 0x4ad   : > { %v3323_v31 = vpop.eup %3322  ;;  %v1884_v39 = vld [vmem:[#allocation4 + $0x48] sm:$0xff]  ;;  %v1501_v27 = vmul.f32 %v4523_v14, %v1485_v44 }
 0x4ae   : > { %v1940_v42 = vmul.f32 %v3321_v29, %v1924_v35  ;;  %v1910_v46 = vmul.f32 %v3323_v31, %v1878_v30  ;;  %3326 = vrcp.f32 %v1884_v39 }
 0x4b0   : > { %1978 = vperm.xlu1 %3253, %v1940_v42   ;;  %v1519_v2 = vpop.xlane.xlu0 %1518  ;;  %v1926_v1 = vsub.f32 2.0, %v1910_v46 }
 0x4b1   : > { %v3325_v10 = vpop.eup %3324  ;;  %v1542_v52 = vadd.f32 %v1519_v2, %v1494_v61  ;;  %v1886_v8 = vld [vmem:[#allocation4 + $0x58] sm:$0xff] }
 0x4b2   : > { %v1909_v16 = vmul.f32 %v3325_v10, %v1877_v20  ;;  %v1942_v4 = vmul.f32 %v3323_v31, %v1926_v1  ;;  %3328 = vrcp.f32 %v1886_v8 }
 0x4b3   : > { %1559 = vst.msk [vmem:[#allocation4 + $0x40] sm:$0xff] %vm472_vm2, %v1542_v52 }
 0x4b4   : > { %v1511_v45 = vpop.xlane.xlu0 %1510  ;;  %1973 = vperm.xlu1 %3253, %v1939_v63   ;;  %v1925_v48 = vsub.f32 2.0, %v1909_v16 }
 0x4b5   : > { %v1523_v57 = vpop.xlane.xlu1 %1522  ;;  %v1538_v62 = vadd.f32 %v1511_v45, %v1490_v55 }
 0x4b6   : > { %v1544_v60 = vadd.f32 %v1523_v57, %v1496_v38  ;;  %v1941_v5 = vmul.f32 %v3325_v10, %v1925_v48 }
 0x4b7   : > { %1555 = vst.msk [vmem:[#allocation4 + $0x20] sm:$0xff] %vm472_vm2, %v1538_v62 }
 0x4b8   : > { %v3327_v13 = vpop.eup %3326  ;;  %1561 = vst.msk [vmem:[#allocation4 + $0x50] sm:$0xff] %vm472_vm2, %v1544_v60  ;;  %v1513_v24 = vpop.xlane.xlu0 %1512  ;;  %1988 = vperm.xlu1 %3253, %v1942_v4  }
 0x4b9   : > { %v1529_v12 = vpop.xlane.xlu1 %1528  ;;  %v1539_v18 = vadd.f32 %v1513_v24, %v1491_v6  ;;  %v1916_v17 = vmul.f32 %v3327_v13, %v1884_v39 }
 0x4ba   : > { %v1547_v22 = vadd.f32 %v1529_v12, %v1499_v19  ;;  %v1883_v50 = vld [vmem:[#allocation4 + $0x40] sm:$0xff] }
 0x4bb   : > { %1556 = vst.msk [vmem:[#allocation4 + $0x28] sm:$0xff] %vm472_vm2, %v1539_v18  ;;  %v1932_v9 = vsub.f32 2.0, %v1916_v17  ;;  %3330 = vrcp.f32 %v1883_v50 }
 0x4bc   : > { %1564 = vst.msk [vmem:[#allocation4 + $0x68] sm:$0xff] %vm472_vm2, %v1547_v22  ;;  %v1515_v23 = vpop.xlane.xlu0 %1514  ;;  %1983 = vperm.xlu1 %3253, %v1941_v5   ;;  %v3329_v40 = vpop.eup %3328  ;;  %v1567_v5 = vld [vmem:[#allocation5] sm:$0xff] }
 0x4bd   : > { %v1527_v30 = vpop.xlane.xlu1 %1526  ;;  %v1540_v0 = vadd.f32 %v1515_v23, %v1492_v15  ;;  %v1948_v32 = vmul.f32 %v3327_v13, %v1932_v9  ;;  %v1918_v46 = vmul.f32 %v3329_v40, %v1886_v8 }
 0x4be   : > { %v1546_v37 = vadd.f32 %v1527_v30, %v1498_v25  ;;  %v1879_v20 = vld [vmem:[#allocation4 + $0x20] sm:$0xff] }
 0x4bf   : > { %1557 = vst.msk [vmem:[#allocation4 + $0x30] sm:$0xff] %vm472_vm2, %v1540_v0  ;;  %2018 = vperm.xlu0 %3252, %v1948_v32   ;;  %v1885_v36 = vld [vmem:[#allocation4 + $0x50] sm:$0xff]  ;;  %3332 = vrcp.f32 %v1879_v20  ;;  %v1934_v7 = vsub.f32 2.0, %v1918_v46 }
 0x4c0   : > { %1563 = vst.msk [vmem:[#allocation4 + $0x60] sm:$0xff] %vm472_vm2, %v1546_v37  ;;  %v1517_v43 = vpop.xlane.xlu0 %1516  ;;  %3334 = vrcp.f32 %v1885_v36 }
 0x4c1   : > { %v1531_v28 = vpop.xlane.xlu1 %1530  ;;  %v1541_v29 = vadd.f32 %v1517_v43, %v1493_v33  ;;  %v1950_v45 = vmul.f32 %v3329_v40, %v1934_v7 }
 0x4c2   : > { %v1548_v53 = vadd.f32 %v1531_v28, %v1500_v21  ;;  %v1880_v35 = vld [vmem:[#allocation4 + $0x28] sm:$0xff] }
 0x4c3   : > { %1558 = vst.msk [vmem:[#allocation4 + $0x38] sm:$0xff] %vm472_vm2, %v1541_v29  ;;  %3336 = vrcp.f32 %v1880_v35  ;;  %v1888_v31 = vld [vmem:[#allocation4 + $0x68] sm:$0xff] }
 0x4c4   : > { %1565 = vst.msk [vmem:[#allocation4 + $0x70] sm:$0xff] %vm472_vm2, %v1548_v53  ;;  %3338 = vrcp.f32 %v1888_v31 }
 0x4c5   : > { %v3331_v39 = vpop.eup %3330  ;;  %v1533_v42 = vpop.xlane.xlu1 %1532 }
 0x4c6   : > { %v1549_v41 = vadd.f32 %v1533_v42, %v1501_v27  ;;  %v1915_v47 = vmul.f32 %v3331_v39, %v1883_v50  ;;  %v1881_v61 = vld [vmem:[#allocation4 + $0x30] sm:$0xff]  ;;  %v1568_v50 = vld [vmem:[#allocation5 + $0x8] sm:$0xff] }
 0x4c7   : > { %v1887_v2 = vld [vmem:[#allocation4 + $0x60] sm:$0xff]  ;;  %3340 = vrcp.f32 %v1881_v61  ;;  %v1569_v42 = vld [vmem:[#allocation5 + $0x10] sm:$0xff] }
 0x4c8   : > { %1566 = vst.msk [vmem:[#allocation4 + $0x78] sm:$0xff] %vm472_vm2, %v1549_v41  ;;  %v1931_v51 = vsub.f32 2.0, %v1915_v47  ;;  %3342 = vrcp.f32 %v1887_v2  ;;  %v1586_v56 = vpop.permute.xlu0 %1585 }
 0x4c9   : > { %v3333_v11 = vpop.eup %3332  ;;  %v4559_v59 = vpop.permute.xlu1 %1625  ;;  %v1663_v0 = vmul.f32 %v1586_v56, %v1567_v5  ;;  %v1577_v5 = vld [vmem:[#allocation5 + $0x50] sm:$0xff] }
 0x4ca   : > { %v3335_v10 = vpop.eup %3334  ;;  %v1947_v52 = vmul.f32 %v3331_v39, %v1931_v51  ;;  %v1882_v14 = vld [vmem:[#allocation4 + $0x38] sm:$0xff]  ;;  %v1911_v55 = vmul.f32 %v3333_v11, %v1879_v20 }
 0x4cb   : > { %v1917_v26 = vmul.f32 %v3335_v10, %v1885_v36  ;;  %v1889_v63 = vld [vmem:[#allocation4 + $0x70] sm:$0xff]  ;;  %3344 = vrcp.f32 %v1882_v14  ;;  %v1570_v39 = vld [vmem:[#allocation5 + $0x18] sm:$0xff] }
 0x4cc   : > { %2013 = vperm.xlu0 %3252, %v1947_v52   ;;  %3346 = vrcp.f32 %v1889_v63  ;;  %v1927_v8 = vsub.f32 2.0, %v1911_v55  ;;  %v1631_v43 = vpop.permute.xlu0 %1630 }
 0x4cd   : > { %v3337_v1 = vpop.eup %3336  ;;  %v1591_v16 = vpop.permute.xlu1 %1590  ;;  %v1933_v3 = vsub.f32 2.0, %v1917_v26  ;;  %v1571_v26 = vld [vmem:[#allocation5 + $0x20] sm:$0xff] }
 0x4ce   : > { %v3339_v38 = vpop.eup %3338  ;;  %v1912_v57 = vmul.f32 %v3337_v1, %v1880_v35  ;;  %v1943_v17 = vmul.f32 %v3333_v11, %v1927_v8  ;;  %v1664_v32 = vmul.f32 %v1591_v16, %v1568_v50 }
 0x4cf   : > { %v1920_v62 = vmul.f32 %v3339_v38, %v1888_v31  ;;  %v1890_v49 = vld [vmem:[#allocation4 + $0x78] sm:$0xff]  ;;  %v1949_v13 = vmul.f32 %v3335_v10, %v1933_v3 }
 0x4d0   : > { %2028 = vperm.xlu0 %3252, %v1950_v45   ;;  %v1928_v60 = vsub.f32 2.0, %v1912_v57  ;;  %3348 = vrcp.f32 %v1890_v49  ;;  %v1636_v41 = vpop.permute.xlu0 %1635 }
 0x4d1   : > { %v3341_v4 = vpop.eup %3340  ;;  %v1596_v48 = vpop.permute.xlu1 %1595  ;;  %v1936_v24 = vsub.f32 2.0, %v1920_v62  ;;  %v1574_v62 = vld [vmem:[#allocation5 + $0x38] sm:$0xff] }
 0x4d2   : > { %v3343_v6 = vpop.eup %3342  ;;  %v1944_v19 = vmul.f32 %v3337_v1, %v1928_v60  ;;  %v1913_v58 = vmul.f32 %v3341_v4, %v1881_v61  ;;  %v1665_v61 = vmul.f32 %v1596_v48, %v1569_v42  ;;  %v1573_v60 = vld [vmem:[#allocation5 + $0x30] sm:$0xff]  ;;  %v1576_v48 = vld [vmem:[#allocation5 + $0x48] sm:$0xff] }
 0x4d3   : > { %v1919_v12 = vmul.f32 %v3343_v6, %v1887_v2  ;;  %v1952_v15 = vmul.f32 %v3339_v38, %v1936_v24 }
 0x4d4   : > { %2023 = vperm.xlu0 %3252, %v1949_v13   ;;  %1998 = vperm.xlu1 %3253, %v1944_v19   ;;  %v1929_v25 = vsub.f32 2.0, %v1913_v58  ;;  %v1641_v7 = vpop.permute.xlu0 %1640  ;;  %v1575_v19 = vld [vmem:[#allocation5 + $0x40] sm:$0xff] }
 0x4d5   : > { %v3345_v18 = vpop.eup %3344  ;;  %v1935_v9 = vsub.f32 2.0, %v1919_v12  ;;  %v1601_v54 = vpop.permute.xlu1 %1600  ;;  %v1671_v56 = vmul.f32 %v4559_v59, %v1575_v19 }
 0x4d6   : > { %v3347_v22 = vpop.eup %3346  ;;  %v1914_v23 = vmul.f32 %v3345_v18, %v1882_v14  ;;  %v1945_v33 = vmul.f32 %v3341_v4, %v1929_v25  ;;  %v1666_v47 = vmul.f32 %v1601_v54, %v1570_v39  ;;  %v1572_v14 = vld [vmem:[#allocation5 + $0x28] sm:$0xff]  ;;  %v1673_v54 = vmul.f32 %v1636_v41, %v1577_v5 }
 0x4d7   : > { %v1921_v30 = vmul.f32 %v3347_v22, %v1889_v63  ;;  %v1951_v20 = vmul.f32 %v3343_v6, %v1935_v9 }
 0x4d8   : > { %2038 = vperm.xlu0 %3252, %v1952_v15   ;;  %1993 = vperm.xlu1 %3253, %v1943_v17   ;;  %v1930_v21 = vsub.f32 2.0, %v1914_v23  ;;  %v1646_v3 = vpop.permute.xlu0 %1645  ;;  %v1578_v17 = vld [vmem:[#allocation5 + $0x58] sm:$0xff] }
 0x4d9   : > { %v1937_v36 = vsub.f32 2.0, %v1921_v30  ;;  %v1606_v35 = vpop.permute.xlu1 %1605  ;;  %v1674_v23 = vmul.f32 %v1641_v7, %v1578_v17  ;;  %v1580_v30 = vld [vmem:[#allocation5 + $0x68] sm:$0xff] }
 0x4da   : > { %v3349_v34 = vpop.eup %3348  ;;  %v2960_v37 = vpop.f32.mrb[32].mxu1  ;;  %v1946_v31 = vmul.f32 %v3345_v18, %v1930_v21  ;;  %v1667_v16 = vmul.f32 %v1606_v35, %v1571_v26  ;;  %v1672_v18 = vmul.f32 %v1631_v43, %v1576_v48 }
 0x4db   : > { %v1825_v28 = vadd.f32 %v2960_v37, %v1664_v32  ;;  %v1745_v29 = vpop.f32.mrb[33].mxu1  ;;  %v1922_v44 = vmul.f32 %v3349_v34, %v1890_v49  ;;  %v1953_v40 = vmul.f32 %v3347_v22, %v1937_v36  ;;  %v1579_v32 = vld [vmem:[#allocation5 + $0x60] sm:$0xff]  ;;  %v1582_v36 = vld [vmem:[#allocation5 + $0x78] sm:$0xff] }
 0x4dc   : > { %v1824_v53 = vadd.f32 %v1745_v29, %v1663_v0  ;;  %2033 = vperm.xlu0 %3252, %v1951_v20   ;;  %2003 = vperm.xlu1 %3253, %v1945_v33   ;;  %v1651_v8 = vpop.permute.xlu0 %1650  ;;  %v1675_v33 = vmul.f32 %v1646_v3, %v1579_v32 }
 0x4dd   : > { %1841 = vst.msk [vmem:[#allocation5 + $0x8] sm:$0xff] %vm505_vm0, %v1825_v28  ;;  %v1938_v27 = vsub.f32 2.0, %v1922_v44  ;;  %v1611_v2 = vpop.permute.xlu1 %1610  ;;  %v1676_v20 = vmul.f32 %v1651_v8, %v1580_v30  ;;  %v1581_v28 = vld [vmem:[#allocation5 + $0x70] sm:$0xff] }
 0x4de   : > { %1840 = vst.msk [vmem:[#allocation5] sm:$0xff] %vm505_vm0, %v1824_v53  ;;  %v1668_v1 = vmul.f32 %v1611_v2, %v1572_v14 }
 0x4df   : > { %v1954_v46 = vmul.f32 %v3349_v34, %v1938_v27 }
 0x4e0   : > { %2043 = vperm.xlu0 %3252, %v1953_v40   ;;  %2008 = vperm.xlu1 %3253, %v1946_v31   ;;  %v1656_v9 = vpop.permute.xlu0 %1655 }
 0x4e1   : > { %v1616_v63 = vpop.permute.xlu1 %1615  ;;  %v1677_v40 = vmul.f32 %v1656_v9, %v1581_v28  ;;  %v2070_v28 = vld [vmem:[#allocation6 + $0x18] sm:$0xff] }
 0x4e2   : > { %v1669_v6 = vmul.f32 %v1616_v63, %v1573_v60 }
 0x4e3   : > { %v2963_v51 = vpop.f32.mrb[34].mxu1 }
 0x4e4   : > { %v1827_v11 = vadd.f32 %v2963_v51, %v1666_v47  ;;  %v1755_v10 = vpop.f32.mrb[35].mxu1  ;;  %2048 = vperm.xlu0 %3252, %v1954_v46   ;;  %v1661_v21 = vpop.permute.xlu0 %1660 }
 0x4e5   : > { %v1826_v52 = vadd.f32 %v1755_v10, %v1665_v61  ;;  %v1621_v49 = vpop.permute.xlu1 %1620  ;;  %v1678_v35 = vmul.f32 %v1661_v21, %v1582_v36  ;;  %v1955_v47 = vld [vmem:[#allocation5] sm:$0xff]  ;;  %v1956_v61 = vld [vmem:[#allocation5 + $0x8] sm:$0xff] }
 0x4e6   : > { %1843 = vst.msk [vmem:[#allocation5 + $0x18] sm:$0xff] %vm505_vm0, %v1827_v11  ;;  %v1670_v4 = vmul.f32 %v1621_v49, %v1574_v62 }
 0x4e7   : > { %1842 = vst.msk [vmem:[#allocation5 + $0x10] sm:$0xff] %vm505_vm0, %v1826_v52 }
 0x4eb   : > { %v2966_v55 = vpop.f32.mrb[36].mxu1 }
 0x4ec   : > { %v1829_v38 = vadd.f32 %v2966_v55, %v1668_v1  ;;  %v1765_v45 = vpop.f32.mrb[37].mxu1 }
 0x4ed   : > { %v1828_v57 = vadd.f32 %v1765_v45, %v1667_v16  ;;  %v1958_v7 = vld [vmem:[#allocation5 + $0x18] sm:$0xff] }
 0x4ee   : > { %1845 = vst.msk [vmem:[#allocation5 + $0x28] sm:$0xff] %vm505_vm0, %v1829_v38  ;;  %v1957_v10 = vld [vmem:[#allocation5 + $0x10] sm:$0xff] }
 0x4ef   : > { %1844 = vst.msk [vmem:[#allocation5 + $0x20] sm:$0xff] %vm505_vm0, %v1828_v57 }
 0x4f3   : > { %v2969_v13 = vpop.f32.mrb[38].mxu1 }
 0x4f4   : > { %v1831_v24 = vadd.f32 %v2969_v13, %v1670_v4  ;;  %v1775_v58 = vpop.f32.mrb[39].mxu1 }
 0x4f5   : > { %v1830_v12 = vadd.f32 %v1775_v58, %v1669_v6  ;;  %v1960_v19 = vld [vmem:[#allocation5 + $0x28] sm:$0xff] }
 0x4f6   : > { %1847 = vst.msk [vmem:[#allocation5 + $0x38] sm:$0xff] %vm505_vm0, %v1831_v24  ;;  %v1959_v6 = vld [vmem:[#allocation5 + $0x20] sm:$0xff] }
 0x4f7   : > { %1846 = vst.msk [vmem:[#allocation5 + $0x30] sm:$0xff] %vm505_vm0, %v1830_v12  ;;  %v2972_v22 = vpop.f32.mrb[40].mxu1 }
 0x4f8   : > { %v1833_v50 = vadd.f32 %v2972_v22, %v1672_v18  ;;  %v1785_v15 = vpop.f32.mrb[41].mxu1 }
 0x4f9   : > { %v1832_v25 = vadd.f32 %v1785_v15, %v1671_v56 }
 0x4fa   : > { %1849 = vst.msk [vmem:[#allocation5 + $0x48] sm:$0xff] %vm505_vm0, %v1833_v50 }
 0x4fb   : > { %1848 = vst.msk [vmem:[#allocation5 + $0x40] sm:$0xff] %vm505_vm0, %v1832_v25  ;;  %v2975_v0 = vpop.f32.mrb[42].mxu1 }
 0x4fc   : > { %v1835_v34 = vadd.f32 %v2975_v0, %v1674_v23  ;;  %v1795_v59 = vpop.f32.mrb[43].mxu1 }
 0x4fd   : > { %v1834_v37 = vadd.f32 %v1795_v59, %v1673_v54  ;;  %v1962_v23 = vld [vmem:[#allocation5 + $0x38] sm:$0xff] }
 0x4fe   : > { %1851 = vst.msk [vmem:[#allocation5 + $0x58] sm:$0xff] %vm505_vm0, %v1835_v34  ;;  %v1961_v56 = vld [vmem:[#allocation5 + $0x30] sm:$0xff] }
 0x4ff   : > { %1850 = vst.msk [vmem:[#allocation5 + $0x50] sm:$0xff] %vm505_vm0, %v1834_v37  ;;  %v2978_v43 = vpop.f32.mrb[44].mxu1  ;;  %v2068_v37 = vld [vmem:[#allocation6 + $0x8] sm:$0xff] }
 0x500   : > { %v1837_v29 = vadd.f32 %v2978_v43, %v1676_v20  ;;  %v1805_v44 = vpop.f32.mrb[45].mxu1  ;;  %v2067_v20 = vld [vmem:[#allocation6] sm:$0xff] }
 0x501   : > { %v1836_v53 = vadd.f32 %v1805_v44, %v1675_v33  ;;  %v1964_v55 = vld [vmem:[#allocation5 + $0x48] sm:$0xff] }
 0x502   : > { %1853 = vst.msk [vmem:[#allocation5 + $0x68] sm:$0xff] %vm505_vm0, %v1837_v29  ;;  %v1963_v1 = vld [vmem:[#allocation5 + $0x40] sm:$0xff]  ;;  %v2069_v29 = vld [vmem:[#allocation6 + $0x10] sm:$0xff] }
 0x503   : > { %1852 = vst.msk [vmem:[#allocation5 + $0x60] sm:$0xff] %vm505_vm0, %v1836_v53  ;;  %v2981_v31 = vpop.f32.mrb[46].mxu1 }
 0x504   : > { %v1839_v27 = vadd.f32 %v2981_v31, %v1678_v35  ;;  %v1815_v39 = vpop.f32.mrb[47].mxu1  ;;  %v2076_v31 = vld [vmem:[#allocation6 + $0x48] sm:$0xff] }
 0x505   : > { %v1838_v42 = vadd.f32 %v1815_v39, %v1677_v40  ;;  %v1966_v60 = vld [vmem:[#allocation5 + $0x58] sm:$0xff] }
 0x506   : > { %1855 = vst.msk [vmem:[#allocation5 + $0x78] sm:$0xff] %vm505_vm0, %v1839_v27  ;;  %v1965_v57 = vld [vmem:[#allocation5 + $0x50] sm:$0xff]  ;;  %v2075_v27 = vld [vmem:[#allocation6 + $0x40] sm:$0xff] }
 0x507   : > { %1854 = vst.msk [vmem:[#allocation5 + $0x70] sm:$0xff] %vm505_vm0, %v1838_v42 }
 0x509   : > { %v1968_v22 = vld [vmem:[#allocation5 + $0x68] sm:$0xff] }
 0x50a   : > { %v1967_v12 = vld [vmem:[#allocation5 + $0x60] sm:$0xff] }
 0x50d   : > { %v1970_v32 = vld [vmem:[#allocation5 + $0x78] sm:$0xff] }
 0x50e   : > { %v1969_v9 = vld [vmem:[#allocation5 + $0x70] sm:$0xff] }
 0x52f   : > { %v1979_v41 = vpop.permute.xlu1 %1978 }
 0x530   : > { %v2052_v51 = vmul.f32 %v1979_v41, %v1956_v61  ;;  %v2077_v61 = vld [vmem:[#allocation6 + $0x50] sm:$0xff] }
 0x533   : > { %v1974_v46 = vpop.permute.xlu1 %1973 }
 0x534   : > { %v2051_v2 = vmul.f32 %v1974_v46, %v1955_v47  ;;  %v2078_v46 = vld [vmem:[#allocation6 + $0x58] sm:$0xff] }
 0x536   : > { %2990 = vmatprep.mubr.msk.f32.mxu0 %vm505_vm0, %v2051_v2 }
 0x537   : > { %2991 = vmatmul.mubr.msk.f32.vlgmr.msra.gmra.mrb[32].mxu0 %vm505_vm0, %v2052_v51  ;;  %v1989_v11 = vpop.permute.xlu1 %1988 }
 0x538   : > { %v2054_v26 = vmul.f32 %v1989_v11, %v1958_v7  ;;  %v2071_v7 = vld [vmem:[#allocation6 + $0x20] sm:$0xff] }
 0x53b   : > { %v1984_v52 = vpop.permute.xlu1 %1983 }
 0x53c   : > { %v2053_v14 = vmul.f32 %v1984_v52, %v1957_v10  ;;  %v2072_v52 = vld [vmem:[#allocation6 + $0x28] sm:$0xff] }
 0x53e   : > { %2993 = vmatprep.mubr.msk.f32.mxu0 %vm505_vm0, %v2053_v14  ;;  %v2019_v63 = vpop.permute.xlu0 %2018 }
 0x53f   : > { %2994 = vmatmul.mubr.msk.f32.gmra.mrb[34].mxu0 %vm505_vm0, %v2054_v26  ;;  %v2060_v45 = vmul.f32 %v2019_v63, %v1964_v55  ;;  %v2079_v55 = vld [vmem:[#allocation6 + $0x60] sm:$0xff] }
 0x54b   : > { %v2014_v16 = vpop.permute.xlu0 %2013 }
 0x54c   : > { %v2059_v38 = vmul.f32 %v2014_v16, %v1963_v1  ;;  %v2080_v16 = vld [vmem:[#allocation6 + $0x68] sm:$0xff] }
 0x54e   : > { %3002 = vmatprep.mubr.msk.f32.mxu1 %vm505_vm0, %v2059_v38 }
 0x54f   : > { %3003 = vmatmul.mubr.msk.f32.vlgmr.msra.gmra.mrb[48].mxu1 %vm505_vm0, %v2060_v45  ;;  %v2029_v3 = vpop.permute.xlu0 %2028 }
 0x550   : > { %v2062_v48 = vmul.f32 %v2029_v3, %v1966_v60 }
 0x553   : > { %v2024_v62 = vpop.permute.xlu0 %2023  ;;  %v1999_v49 = vpop.permute.xlu1 %1998 }
 0x554   : > { %v2061_v4 = vmul.f32 %v2024_v62, %v1965_v57  ;;  %v2056_v58 = vmul.f32 %v1999_v49, %v1960_v19  ;;  %v2074_v57 = vld [vmem:[#allocation6 + $0x38] sm:$0xff]  ;;  %v2073_v49 = vld [vmem:[#allocation6 + $0x30] sm:$0xff] }
 0x556   : > { %3005 = vmatprep.mubr.msk.f32.mxu1 %vm505_vm0, %v2061_v4 }
 0x557   : > { %3006 = vmatmul.mubr.msk.f32.gmra.mrb[50].mxu1 %vm505_vm0, %v2062_v48  ;;  %v2039_v8 = vpop.permute.xlu0 %2038  ;;  %v1994_v13 = vpop.permute.xlu1 %1993 }
 0x558   : > { %v2055_v24 = vmul.f32 %v1994_v13, %v1959_v6  ;;  %v2064_v15 = vmul.f32 %v2039_v8, %v1968_v22  ;;  %v2082_v6 = vld [vmem:[#allocation6 + $0x78] sm:$0xff]  ;;  %v2081_v13 = vld [vmem:[#allocation6 + $0x70] sm:$0xff] }
 0x55a   : > { %2996 = vmatprep.mubr.msk.f32.mxu0 %vm505_vm0, %v2055_v24 }
 0x55b   : > { %v2034_v18 = vpop.permute.xlu0 %2033  ;;  %2997 = vmatmul.mubr.msk.f32.gmra.mrb[36].mxu0 %vm505_vm0, %v2056_v58  ;;  %v2004_v17 = vpop.permute.xlu1 %2003 }
 0x55c   : > { %v2063_v5 = vmul.f32 %v2034_v18, %v1967_v12  ;;  %v2057_v50 = vmul.f32 %v2004_v17, %v1961_v56 }
 0x55e   : > { %2999 = vmatprep.mubr.msk.f32.mxu0 %vm505_vm0, %v2057_v50  ;;  %3008 = vmatprep.mubr.msk.f32.mxu1 %vm505_vm0, %v2063_v5 }
 0x55f   : > { %3009 = vmatmul.mubr.msk.f32.gmra.mrb[52].mxu1 %vm505_vm0, %v2064_v15  ;;  %v2044_v25 = vpop.permute.xlu0 %2043  ;;  %v2009_v54 = vpop.permute.xlu1 %2008 }
 0x560   : > { %v2065_v30 = vmul.f32 %v2044_v25, %v1969_v9  ;;  %v2058_v0 = vmul.f32 %v2009_v54, %v1962_v23 }
 0x562   : > { %3000 = vmatmul.mubr.msk.f32.gmra.mrb[38].mxu0 %vm505_vm0, %v2058_v0  ;;  %3011 = vmatprep.mubr.msk.f32.mxu1 %vm505_vm0, %v2065_v30 }
 0x563   : > { %v2049_v34 = vpop.permute.xlu0 %2048 }
 0x564   : > { %v2066_v59 = vmul.f32 %v2049_v34, %v1970_v32 }
 0x566   : > { %3012 = vmatmul.mubr.msk.f32.gmra.mrb[54].mxu1 %vm505_vm0, %v2066_v59 }
 0x60a   : > { %v2992_v33 = vpop.f32.mrb[32].mxu0 }
 0x60b   : > { %v2281_v36 = vadd.f32 %v2992_v33, %v2068_v37  ;;  %v2201_v21 = vpop.f32.mrb[33].mxu0 }
 0x60c   : > { %v2280_v43 = vadd.f32 %v2201_v21, %v2067_v20 }
 0x60d   : > { %2297 = vst [vmem:[#allocation6 + $0x8] sm:$0xff] %v2281_v36 }
 0x60e   : > { %2296 = vst [vmem:[#allocation6] sm:$0xff] %v2280_v43 }
 0x612   : > { %v2995_v44 = vpop.f32.mrb[34].mxu0 }
 0x613   : > { %v2283_v53 = vadd.f32 %v2995_v44, %v2070_v28  ;;  %v2211_v35 = vpop.f32.mrb[35].mxu0 }
 0x614   : > { %v2282_v40 = vadd.f32 %v2211_v35, %v2069_v29  ;;  %v2318_v56 = vld [vmem:[#allocation6 + $0x8] sm:$0xff] (%p2312_p10) }
 0x615   : > { %2299 = vst [vmem:[#allocation6 + $0x18] sm:$0xff] %v2283_v53  ;;  %v2317_v18 = vld [vmem:[#allocation6] sm:$0xff] (%p2312_p10)  ;;  %2334 = vst [vmem:[%s4051_s3 + $0x8] sm:$0xff] (%p2312_p10), %v2318_v56 }
 0x616   : > { %2298 = vst [vmem:[#allocation6 + $0x10] sm:$0xff] %v2282_v40  ;;  %2333 = vst [vmem:[%s4051_s3] sm:$0xff] (%p2312_p10), %v2317_v18 }
 0x61c   : > { %v2320_v22 = vld [vmem:[#allocation6 + $0x18] sm:$0xff] (%p2312_p10) }
 0x61d   : > { %v2319_v17 = vld [vmem:[#allocation6 + $0x10] sm:$0xff] (%p2312_p10)  ;;  %2336 = vst [vmem:[%s4051_s3 + $0x18] sm:$0xff] (%p2312_p10), %v2320_v22 }
 0x61e   : > { %2335 = vst [vmem:[%s4051_s3 + $0x10] sm:$0xff] (%p2312_p10), %v2319_v17 }
 0x622   : > { %v3004_v39 = vpop.f32.mrb[48].mxu1 }
 0x623   : > { %v2289_v42 = vadd.f32 %v3004_v39, %v2076_v31  ;;  %v2241_v41 = vpop.f32.mrb[49].mxu1 }
 0x624   : > { %v2288_v47 = vadd.f32 %v2241_v41, %v2075_v27 }
 0x625   : > { %2305 = vst [vmem:[#allocation6 + $0x48] sm:$0xff] %v2289_v42 }
 0x626   : > { %2304 = vst [vmem:[#allocation6 + $0x40] sm:$0xff] %v2288_v47 }
 0x62a   : > { %v3007_v2 = vpop.f32.mrb[50].mxu1 }
 0x62b   : > { %v2291_v51 = vadd.f32 %v3007_v2, %v2078_v46  ;;  %v2251_v11 = vpop.f32.mrb[51].mxu1 }
 0x62c   : > { %v2290_v10 = vadd.f32 %v2251_v11, %v2077_v61  ;;  %v2326_v23 = vld [vmem:[#allocation6 + $0x48] sm:$0xff] (%p2312_p10) }
 0x62d   : > { %2307 = vst [vmem:[#allocation6 + $0x58] sm:$0xff] %v2291_v51  ;;  %v2325_v25 = vld [vmem:[#allocation6 + $0x40] sm:$0xff] (%p2312_p10)  ;;  %2342 = vst [vmem:[%s4051_s3 + $0x48] sm:$0xff] (%p2312_p10), %v2326_v23 }
 0x62e   : > { %2306 = vst [vmem:[#allocation6 + $0x50] sm:$0xff] %v2290_v10  ;;  %v2998_v14 = vpop.f32.mrb[36].mxu0  ;;  %2341 = vst [vmem:[%s4051_s3 + $0x40] sm:$0xff] (%p2312_p10), %v2325_v25 }
 0x62f   : > { %v2285_v26 = vadd.f32 %v2998_v14, %v2072_v52  ;;  %v2221_v63 = vpop.f32.mrb[37].mxu0 }
 0x630   : > { %v2284_v1 = vadd.f32 %v2221_v63, %v2071_v7 }
 0x631   : > { %2301 = vst [vmem:[#allocation6 + $0x28] sm:$0xff] %v2285_v26 }
 0x632   : > { %2300 = vst [vmem:[#allocation6 + $0x20] sm:$0xff] %v2284_v1  ;;  %v3010_v38 = vpop.f32.mrb[52].mxu1 }
 0x633   : > { %v2293_v45 = vadd.f32 %v3010_v38, %v2080_v16  ;;  %v2261_v3 = vpop.f32.mrb[53].mxu1 }
 0x634   : > { %v2292_v62 = vadd.f32 %v2261_v3, %v2079_v55  ;;  %v2328_v30 = vld [vmem:[#allocation6 + $0x58] sm:$0xff] (%p2312_p10) }
 0x635   : > { %2309 = vst [vmem:[#allocation6 + $0x68] sm:$0xff] %v2293_v45  ;;  %v3001_v60 = vpop.f32.mrb[38].mxu0  ;;  %v2327_v54 = vld [vmem:[#allocation6 + $0x50] sm:$0xff] (%p2312_p10)  ;;  %2344 = vst [vmem:[%s4051_s3 + $0x58] sm:$0xff] (%p2312_p10), %v2328_v30 }
 0x636   : > { %2308 = vst [vmem:[#allocation6 + $0x60] sm:$0xff] %v2292_v62  ;;  %v2287_v4 = vadd.f32 %v3001_v60, %v2074_v57  ;;  %v2231_v48 = vpop.f32.mrb[39].mxu0  ;;  %2343 = vst [vmem:[%s4051_s3 + $0x50] sm:$0xff] (%p2312_p10), %v2327_v54 }
 0x637   : > { %v2286_v8 = vadd.f32 %v2231_v48, %v2073_v49  ;;  %2316 = sbr.rel (!%p2312_p10) target bundleno = 1606 (0x646), region = 76 }
 0x638   : > { %2303 = vst [vmem:[#allocation6 + $0x38] sm:$0xff] %v2287_v4  ;;  %v2322_v50 = vld [vmem:[#allocation6 + $0x28] sm:$0xff] (%p2312_p10) }
 0x639   : > { %2302 = vst [vmem:[#allocation6 + $0x30] sm:$0xff] %v2286_v8  ;;  %v3013_v19 = vpop.f32.mrb[54].mxu1  ;;  %v2321_v5 = vld [vmem:[#allocation6 + $0x20] sm:$0xff] (%p2312_p10)  ;;  %2338 = vst [vmem:[%s4051_s3 + $0x28] sm:$0xff] (%p2312_p10), %v2322_v50 }
 0x63a   : > { %v2295_v24 = vadd.f32 %v3013_v19, %v2082_v6  ;;  %v2271_v58 = vpop.f32.mrb[55].mxu1  ;;  %2337 = vst [vmem:[%s4051_s3 + $0x20] sm:$0xff] (%p2312_p10), %v2321_v5 }
 0x63b   : > { %v2294_v12 = vadd.f32 %v2271_v58, %v2081_v13 }
 0x63c   : > { %2311 = vst [vmem:[#allocation6 + $0x78] sm:$0xff] %v2295_v24  ;;  %v2330_v32 = vld [vmem:[#allocation6 + $0x68] sm:$0xff] (%p2312_p10) }
 0x63d   : > { %2310 = vst [vmem:[#allocation6 + $0x70] sm:$0xff] %v2294_v12  ;;  %v2329_v0 = vld [vmem:[#allocation6 + $0x60] sm:$0xff] (%p2312_p10)  ;;  %2346 = vst [vmem:[%s4051_s3 + $0x68] sm:$0xff] (%p2312_p10), %v2330_v32 }
 0x63e   : > { %2345 = vst [vmem:[%s4051_s3 + $0x60] sm:$0xff] %v2329_v0 }
 0x63f   : > { %v2324_v9 = vld [vmem:[#allocation6 + $0x38] sm:$0xff] }
 0x640   : > { %v2323_v15 = vld [vmem:[#allocation6 + $0x30] sm:$0xff]  ;;  %2340 = vst [vmem:[%s4051_s3 + $0x38] sm:$0xff] %v2324_v9 }
 0x641   : > { %2339 = vst [vmem:[%s4051_s3 + $0x30] sm:$0xff] %v2323_v15 }
 0x643   : > { %v2332_v59 = vld [vmem:[#allocation6 + $0x78] sm:$0xff] }
 0x644   : > { %v2331_v34 = vld [vmem:[#allocation6 + $0x70] sm:$0xff]  ;;  %2348 = vst [vmem:[%s4051_s3 + $0x78] sm:$0xff] %v2332_v59 }
 0x645   : > { %2347 = vst [vmem:[%s4051_s3 + $0x70] sm:$0xff] %v2331_v34 }
 0x646 PF: > { %s4789_s7 = sld [smem:[#allocation24_spill]]  ;;  %s4790_s5 = sld [smem:[#allocation29_spill]] }
 0x647   : > { %s4791_s11 = sld [smem:[#allocation37_spill]]  ;;  %s2365_s10 = sshll.u32 %s4051_s3, 4  ;;  %s4620_s10 = int_to_ptr.vmem [resolvable:$true] %s2365_s10 }
 0x648   : > { %s2350_s17 = scalar_lea.sflag [#allocation9], %s4024_s12  ;;  %s3500_s15 = scalar_lea.vmem %s4620_s10, 2048 }
 0x649   : > { %p3501_p3 = scmp.ne.s32.totalorder %s4620_s10, %s3500_s15  ;;  %s3643_s29 = smov [#allocation16]  }
 0x64a   : > { %s3504_s16 = sshll.u32 %s3643_s29, 4  ;;  %s3505_s16 = int_to_ptr.vmem [resolvable:$false] %s3504_s16 }
 0x64b   : > { %s3506_s30 = scalar_lea.vmem %s3505_s16, 4096  ;;  %p3507_p0 = scmp.lt.s32.totalorder %s4620_s10, %s3505_s16 }
 0x64c   : > { %s2641_s8 = sshll.u32 %s4789_s7, 11  ;;  %p4792_p7 = scmp.ne.s32.totalorder %s4790_s5, 0 }
 0x64d   : > { %s4617_s26 = scalar_lea.hbm %s4791_s11, %s2641_s8  ;;  %p3508_p8 = scmp.lt.s32.totalorder %s3506_s30, %s3500_s15 }
 0x64e   : > { %p3502_p12 = pnand %p3501_p3, %p4792_p7 }
 0x64f   : > { %p3509_p2 = por %p3508_p8, %p3507_p0 }
 0x650   : > { %p3503_p13 = pneg %p3502_p12 }
 0x652   : > { %p3510_p11 = pnand %p3509_p2, %p3503_p13 }
 0x654   : > { %3513 = shalt.err (!%p3510_p11)
}
 0x655   : > { %s3514_s19 = scalar_lea.hbm %s4617_s26, 2048  ;;  %s3518_s1 = scalar_lea.hbm %s4791_s11, 4096 }
 0x656   : > { %p3515_p6 = scmp.ne.s32.totalorder %s4617_s26, %s3514_s19  ;;  %p3519_p9 = scmp.lt.u32.totalorder %s4617_s26, %s4791_s11 }
 0x657   : > { %p3520_p1 = scmp.lt.u32.totalorder %s3518_s1, %s3514_s19  ;;  %p3522_p3 = scmp.lt.u32.totalorder %s3514_s19, %s4617_s26 }
 0x658   : > { %p3516_p5 = pnand %p3515_p6, %p4792_p7 }
 0x659   : > { %p3521_p10 = por %p3520_p1, %p3519_p9 }
 0x65a   : > { %p3517_p4 = pneg %p3516_p5 }
 0x65b   : > { %p3523_p12 = por %p3522_p3, %p3521_p10 }
 0x65d   : > { %p3524_p13 = pnand %p3523_p12, %p3517_p4 }
 0x65f   : > { %3527 = shalt.err (!%p3524_p13)
}
 0x660   : > { %s3644_s24 = smov 128   ;;  %s3645_s3 = smov 8  }
 0x661   : > { %3132 = dma.vmem_to_hbm [thread:$0]  (%p4792_p7), %s4620_s10, 2048, %s4617_s26, %s2350_s17, %s3644_s24, %s3644_s24, %s3645_s3  }
 0x662 PF: > { %s4793_s6 = sld [smem:[#allocation22_spill]]  ;;  %s4794_s7 = sld [smem:[#allocation30_spill]] }
 0x663   : > { %p3155_p0 = scmp.ge.s32.totalorder %s3630_s28, 2 }
 0x668   : > { %s2380_s8 = sand.u32 1, %s4793_s6   ;;  %p4795_p8 = scmp.ne.s32.totalorder %s4794_s7, 0 }
 0x669   : > { %s2381_s25 = scalar_lea.sflag [#allocation9], %s2380_s8 }
 0x66a   : > { %p3151_p2 = pnand %p3155_p0, %p4795_p8 }
 0x66c   : > { %3585 = dma.done.wait (!%p3151_p2), %s2381_s25, 2048  }
 0x66d   : > { %3587 = vsyncadd (!%p3151_p2), %s2381_s25, 4294965248  ;;  %s27_s28 = sadd.s32 1, %s3630_s28   ;;  %s4796_s18 = sld [smem:[#allocation21_spill]] }
 0x66e   : > { %p24_p11 = scmp.ge.s32.totalorder %s27_s28, 10   ;;  %s4797_s12 = sld [smem:[#allocation34_spill]] }
 0x66f   : > { %s4798_s24 = sld [smem:[#allocation25_spill]]  ;;  %s4799_s25 = sld [smem:[#allocation26_spill]] }
 0x670   : > { %s4800_s26 = sld [smem:[#allocation31_spill]]  ;;  %s4801_s27 = sld [smem:[#allocation33_spill]] }
 0x671   : > { %s4802_s19 = smov %s3598_s20  ;;  %s4803_s20 = smov %s3857_s9 }
 0x672   : > { %s4804_s21 = smov %s3606_s22  ;;  %s4805_s22 = smov %s3610_s23 }
 0x673   :  { %26 = sbr.rel (!%p24_p11) target bundleno = 17 (0x11), region = 149 }
 0x674   : > { %s4806_s23 = smov %s4797_s12 }
 0x67a   :  { %2386 = vsyncpa [#allocation8], 1 }
 0x67b   :  { %2388 = vsyncpa [#allocation8 + $0x1], 1 }
 0x67c   :  { %2389 = vsyncpa [#allocation11], 1 }
 0x67d   :  { %2391 = vsyncpa [#allocation11 + $0x1], 1 }
 0x67e   :  { %2392 = vsyncpa [#allocation14], 1 }
 0x67f   :  { %2394 = vsyncpa [#allocation14 + $0x1], 1 }
 0x680   :  { %2395 = vsyncpa [#allocation9], 1 }
 0x681   :  { %2397 = vsyncpa [#allocation9 + $0x1], 1 }

</bundles_post_ra>
